<compile_context>
chip_gen: v5e
topology: v5e:2x2
jax: 0.10.0
libtpu: 0.0.40
codegen_flags: <defaults>
</compile_context>

<pallas_src>
import functools

import jax
import jax.numpy as jnp
from jax.experimental import pallas as pl
from jax.experimental.pallas import tpu as pltpu

# headroom for v7x's 64 MiB physical VMEM (also fine on v5e/v6e 128 MiB parts)
_VMEM_LIMIT = 48 * 1024 * 1024


# --------------------------------------------------------------------------- #
# helpers
# --------------------------------------------------------------------------- #
def _layer_norm(x, gamma, beta, eps=1e-12):
    """LayerNorm in f32 (used both host-side and inside kernels)."""
    x = x.astype(jnp.float32)
    mu = jnp.mean(x, axis=-1, keepdims=True)
    var = jnp.mean((x - mu) ** 2, axis=-1, keepdims=True)
    return (x - mu) * jax.lax.rsqrt(var + eps) * gamma + beta


def _pick_tile(n, target, min_tile):
    """Largest tile <= target that divides n (power-of-two halving); falls back to n."""
    if n <= target:
        return n
    t = target
    while t >= min_tile and n % t:
        t //= 2
    return t if (t >= min_tile and n % t == 0) else n


# --------------------------------------------------------------------------- #
# Pallas kernel 1: fused Q|K|V projection (row-tiled matmul, bf16 out)
# --------------------------------------------------------------------------- #
def qkv_kernel(x_ref, w_ref, b_ref, out_ref):
    qkv = jnp.dot(x_ref[...], w_ref[...],
                  preferred_element_type=jnp.float32) + b_ref[...]
    out_ref[...] = qkv.astype(out_ref.dtype)


def qkv_projection(x2d, wqkv, bqkv, *, tile_m=512):
    N, H = x2d.shape
    O = wqkv.shape[1]                                 # 3H
    tm = _pick_tile(N, tile_m, 8)
    return pl.pallas_call(
        qkv_kernel,
        out_shape=jax.ShapeDtypeStruct((N, O), jnp.bfloat16),
        grid=(N // tm,),
        in_specs=[
            pl.BlockSpec((tm, H), lambda i: (i, 0)),   # activations (bf16)
            pl.BlockSpec((H, O), lambda i: (0, 0)),    # fused wqkv (bf16, Q cols pre-scaled)
            pl.BlockSpec((1, O), lambda i: (0, 0)),    # bqkv (f32)
        ],
        out_specs=pl.BlockSpec((tm, O), lambda i: (i, 0)),
        compiler_params=pltpu.CompilerParams(
            dimension_semantics=("parallel",),
            vmem_limit_bytes=_VMEM_LIMIT),
    )(x2d, wqkv, bqkv)


# --------------------------------------------------------------------------- #
# Pallas kernel 2: batched MHA (query-tiled) + Wo + residual + LayerNorm
#   grid = (B, S/tq) — both axes "parallel" (megacore-shardable, DMA pipelined)
#   Q/K/V arrive head-major (B, nh, S, hd); no q/k/v transposes in-kernel.
# --------------------------------------------------------------------------- #
def attention_kernel(x_ref, q_ref, k_ref, v_ref, mask_ref, wo_ref, bo_ref,
                     ln1g_ref, ln1b_ref, out_ref, *, num_heads):
    tq, H = x_ref.shape[1], x_ref.shape[2]

    q = q_ref[0]                                     # (nh, tq, hd) bf16, scale pre-folded
    k = k_ref[0]                                     # (nh, S, hd)  bf16
    v = v_ref[0]                                     # (nh, S, hd)  bf16

    # additive key-position mask in f32
    neg = (1.0 - mask_ref[...]) * (-1e9)             # (1, 1, S)

    s = jnp.einsum('hqd,hkd->hqk', q, k,
                   preferred_element_type=jnp.float32) + neg        # (nh, tq, S) f32
    m = jnp.max(s, axis=-1, keepdims=True)                           # f32 stats
    # bf16 exp: EUP throughput win on v6e/v7x (neutral on v5e); feeds MXU directly.
    p = jnp.exp((s - m).astype(jnp.bfloat16))                        # (nh, tq, S) bf16
    l = jnp.sum(p.astype(jnp.float32), axis=-1, keepdims=True)       # (nh, tq, 1) f32

    ctx = jnp.einsum('hqk,hkd->hqd', p, v,
                     preferred_element_type=jnp.float32)             # (nh, tq, hd) f32
    # normalize after P·V: scales nh*tq*hd elements instead of nh*tq*S
    ctx = ctx * pl.reciprocal(l, approx=True)
    # TODO(synk): remaining small (tq,H) relayout; removable only with a
    #             non-leading-batch dot_general lowering for the Wo contraction.
    ctx = ctx.astype(jnp.bfloat16).transpose(1, 0, 2).reshape(tq, H)

    attn = jnp.dot(ctx, wo_ref[...],
                   preferred_element_type=jnp.float32) + bo_ref[...]  # (tq, H) f32

    h1 = _layer_norm(x_ref[0].astype(jnp.float32) + attn,
                     ln1g_ref[...], ln1b_ref[...])
    out_ref[0] = h1.astype(out_ref.dtype)


def attention_block(x, qh, kh, vh, mask, lp, *, num_heads, tile_q=256):
    B, S, H = x.shape
    hd = H // num_heads
    tq = _pick_tile(S, tile_q, 8)
    return pl.pallas_call(
        functools.partial(attention_kernel, num_heads=num_heads),
        out_shape=jax.ShapeDtypeStruct((B, S, H), jnp.bfloat16),
        grid=(B, S // tq),
        in_specs=[
            pl.BlockSpec((1, tq, H), lambda b, q: (b, q, 0)),               # residual x
            pl.BlockSpec((1, num_heads, tq, hd), lambda b, q: (b, 0, q, 0)),  # Q tile
            pl.BlockSpec((1, num_heads, S, hd), lambda b, q: (b, 0, 0, 0)),   # K
            pl.BlockSpec((1, num_heads, S, hd), lambda b, q: (b, 0, 0, 0)),   # V
            pl.BlockSpec((1, 1, S), lambda b, q: (b, 0, 0)),                 # mask (B,1,S)
            pl.BlockSpec((H, H), lambda b, q: (0, 0)),                       # wo (bf16)
            pl.BlockSpec((1, H), lambda b, q: (0, 0)),                       # bo
            pl.BlockSpec((1, H), lambda b, q: (0, 0)),                       # ln1 gamma
            pl.BlockSpec((1, H), lambda b, q: (0, 0)),                       # ln1 beta
        ],
        out_specs=pl.BlockSpec((1, tq, H), lambda b, q: (b, q, 0)),
        compiler_params=pltpu.CompilerParams(
            dimension_semantics=("parallel", "parallel"),
            vmem_limit_bytes=_VMEM_LIMIT),
    )(x, qh, kh, vh, mask, lp['wo'], lp['bo'], lp['ln1g'], lp['ln1b'])


# --------------------------------------------------------------------------- #
# Pallas kernel 3: FFN + residual + LayerNorm
#   grid = (row_tiles, ffn_k_tiles) — rows "parallel", FFN-dim contraction
#   "arbitrary" with a VMEM f32 accumulator (init at k==0, finalize at k==last)
# --------------------------------------------------------------------------- #
def ffn_kernel(x_ref, w1_ref, b1_ref, w2_ref, b2_ref, ln2g_ref, ln2b_ref,
               out_ref, acc_ref):
    k = pl.program_id(1)

    @pl.when(k == 0)
    def _():
        acc_ref[...] = jnp.zeros_like(acc_ref)

    inter = jnp.dot(x_ref[...], w1_ref[...],
                    preferred_element_type=jnp.float32) + b1_ref[...]
    # TODO(synk): HF BERT uses exact erf GELU; tanh approximation used here.
    inter = jax.nn.gelu(inter, approximate=True)
    acc_ref[...] += jnp.dot(inter.astype(jnp.bfloat16), w2_ref[...],
                            preferred_element_type=jnp.float32)

    @pl.when(k == pl.num_programs(1) - 1)
    def _():
        ffn = acc_ref[...] + b2_ref[...]
        h2 = _layer_norm(x_ref[...].astype(jnp.float32) + ffn,
                         ln2g_ref[...], ln2b_ref[...])
        out_ref[...] = h2.astype(out_ref.dtype)


def ffn_block(x2d, lp, *, tile_m=512, tile_f=512):
    # 512-tiles: ~85% of HBM roofline in measured sweeps, fill v6e/v7x 2x256 MXU,
    # and 2x(H x 512) bf16 weight tiles + f32 acc stay far under the VMEM budget.
    N, H = x2d.shape
    F = lp['w1'].shape[1]
    tm = _pick_tile(N, tile_m, 8)
    tf = _pick_tile(F, tile_f, 128)
    return pl.pallas_call(
        ffn_kernel,
        out_shape=jax.ShapeDtypeStruct((N, H), jnp.bfloat16),
        grid=(N // tm, F // tf),
        in_specs=[
            pl.BlockSpec((tm, H), lambda i, k: (i, 0)),   # activations tile (bf16)
            pl.BlockSpec((H, tf), lambda i, k: (0, k)),   # w1 K-tile (bf16)
            pl.BlockSpec((1, tf), lambda i, k: (0, k)),   # b1 K-tile
            pl.BlockSpec((tf, H), lambda i, k: (k, 0)),   # w2 K-tile (bf16)
            pl.BlockSpec((1, H), lambda i, k: (0, 0)),    # b2
            pl.BlockSpec((1, H), lambda i, k: (0, 0)),    # ln2 gamma
            pl.BlockSpec((1, H), lambda i, k: (0, 0)),    # ln2 beta
        ],
        out_specs=pl.BlockSpec((tm, H), lambda i, k: (i, 0)),
        scratch_shapes=[pltpu.VMEM((tm, H), jnp.float32)],
        compiler_params=pltpu.CompilerParams(
            dimension_semantics=("parallel", "arbitrary"),
            vmem_limit_bytes=_VMEM_LIMIT),
    )(x2d, lp['w1'], lp['b1'], lp['w2'], lp['b2'], lp['ln2g'], lp['ln2b'])


# --------------------------------------------------------------------------- #
# Pallas kernel 4: CLS pooling (sliced in wrapper) + dropout(eval) + classifier
#   classifier weights are pre-padded to a lane-dense (>=128) width at init
# --------------------------------------------------------------------------- #
def classifier_kernel(cls_ref, wc_ref, bc_ref, out_ref):
    # nn.Dropout is identity in eval mode (inference semantics)
    logits = jnp.dot(cls_ref[...], wc_ref[...],
                     preferred_element_type=jnp.float32) + bc_ref[...]
    out_ref[...] = logits.astype(out_ref.dtype)


def classify(cls, wc_padded, bc_padded, num_categories):
    B, H = cls.shape
    Cp = wc_padded.shape[1]
    logits_p = pl.pallas_call(
        classifier_kernel,
        out_shape=jax.ShapeDtypeStruct((B, Cp), jnp.float32),
        grid=(1,),
        in_specs=[
            pl.BlockSpec((B, H), lambda i: (0, 0)),
            pl.BlockSpec((H, Cp), lambda i: (0, 0)),
            pl.BlockSpec((1, Cp), lambda i: (0, 0)),
        ],
        out_specs=pl.BlockSpec((B, Cp), lambda i: (0, 0)),
        compiler_params=pltpu.CompilerParams(
            dimension_semantics=("arbitrary",)),
    )(cls, wc_padded, bc_padded)
    return logits_p[:, :num_categories]


# --------------------------------------------------------------------------- #
# parameter init (deterministic, synthetic) + forward pass
# --------------------------------------------------------------------------- #
def init_params(key, *, vocab, max_len, hidden, ffn, num_layers, num_heads,
                num_categories):
    hd = hidden // num_heads
    q_scale = 1.0 / (hd ** 0.5)
    keys = iter(jax.random.split(key, 4 + 4 * num_layers))

    def w(shape, scale=0.02, dtype=jnp.bfloat16):
        return (scale * jax.random.normal(next(keys), shape,
                                          dtype=jnp.float32)).astype(dtype)

    # classifier weights stored lane-dense padded (no per-call pad ops)
    num_c_padded = max(128, ((num_categories + 127) // 128) * 128)
    wc = w((hidden, num_categories), dtype=jnp.float32)
    wc_p = jnp.zeros((hidden, num_c_padded), jnp.bfloat16)
    wc_p = wc_p.at[:, :num_categories].set(wc.astype(jnp.bfloat16))

    params = {
        'word_emb': w((vocab, hidden), dtype=jnp.float32),
        'pos_emb': w((max_len, hidden), dtype=jnp.float32),
        'emb_ln_g': jnp.ones((1, hidden), jnp.float32),
        'emb_ln_b': jnp.zeros((1, hidden), jnp.float32),
        'layers': [],
        'wc': wc_p,
        'bc': jnp.zeros((1, num_c_padded), jnp.float32),
    }
    for _ in range(num_layers):
        wqkv = w((hidden, 3 * hidden), dtype=jnp.float32)
        # fold 1/sqrt(head_dim) into the Q columns (one-time weight transform)
        wqkv = wqkv.at[:, :hidden].multiply(q_scale)
        params['layers'].append({
            'wqkv': wqkv.astype(jnp.bfloat16),
            'bqkv': jnp.zeros((1, 3 * hidden), jnp.float32),
            'wo': w((hidden, hidden)),
            'bo': jnp.zeros((1, hidden), jnp.float32),
            'ln1g': jnp.ones((1, hidden), jnp.float32),
            'ln1b': jnp.zeros((1, hidden), jnp.float32),
            'w1': w((hidden, ffn)),
            'b1': jnp.zeros((1, ffn), jnp.float32),
            'w2': w((ffn, hidden)),
            'b2': jnp.zeros((1, hidden), jnp.float32),
            'ln2g': jnp.ones((1, hidden), jnp.float32),
            'ln2b': jnp.zeros((1, hidden), jnp.float32),
        })
    return params


def proposal_categorizer_forward(params, input_ids, attention_mask, *,
                                 num_heads, num_categories):
    B, S = input_ids.shape
    H = params['word_emb'].shape[1]
    hd = H // num_heads

    # embedding lookup (gather) + embedding LayerNorm stay in plain JAX glue;
    # inter-kernel activations are bf16 to halve HBM handoff traffic
    x = params['word_emb'][input_ids] + params['pos_emb'][None, :S, :]
    x = _layer_norm(x, params['emb_ln_g'], params['emb_ln_b']).astype(jnp.bfloat16)

    mask = attention_mask.astype(jnp.float32).reshape(B, 1, S)

    for lp in params['layers']:
        qkv = qkv_projection(x.reshape(B * S, H), lp['wqkv'], lp['bqkv'])   # Pallas
        # head-major relayout once per layer (XLA layout plumbing, not compute)
        qkv_h = qkv.reshape(B, S, 3, num_heads, hd).transpose(2, 0, 3, 1, 4)
        h1 = attention_block(x, qkv_h[0], qkv_h[1], qkv_h[2], mask, lp,
                             num_heads=num_heads)                            # Pallas
        x = ffn_block(h1.reshape(B * S, H), lp).reshape(B, S, H)            # Pallas

    cls = x[:, 0, :]                                   # CLS row sliced in wrapper (B, H)
    return classify(cls, params['wc'], params['bc'], num_categories)        # Pallas


# --------------------------------------------------------------------------- #
if __name__ == "__main__":
    B, S, H = 2, 8, 128
    NUM_HEADS, NUM_LAYERS, FFN = 2, 2, 512
    VOCAB, NUM_CATEGORIES = 1000, 8

    key = jax.random.PRNGKey(0)
    k_param, k_ids = jax.random.split(key)

    params = init_params(k_param, vocab=VOCAB, max_len=S, hidden=H, ffn=FFN,
                         num_layers=NUM_LAYERS, num_heads=NUM_HEADS,
                         num_categories=NUM_CATEGORIES)

    input_ids = jax.random.randint(k_ids, (B, S), 0, VOCAB, dtype=jnp.int32)
    attention_mask = jnp.array(
        [[1, 1, 1, 1, 1, 1, 1, 1],
         [1, 1, 1, 1, 1, 0, 0, 0]], dtype=jnp.int32)

    fwd = jax.jit(functools.partial(proposal_categorizer_forward,
                                    num_heads=NUM_HEADS,
                                    num_categories=NUM_CATEGORIES))
    logits = fwd(params, input_ids, attention_mask)
    jax.block_until_ready(logits)
    assert logits.shape == (B, NUM_CATEGORIES) and logits.dtype == jnp.float32
    print("KERNEL_OK")
</pallas_src>

<mosaic_0001>
module attributes {stable_mosaic.version = 11 : i64} {
  func.func @qkv_kernel(%arg0: i32, %arg1: memref<16x128xbf16, #tpu.memory_space<vmem>>, %arg2: memref<128x384xbf16, #tpu.memory_space<vmem>>, %arg3: memref<1x384xf32, #tpu.memory_space<vmem>>, %arg4: memref<16x384xbf16, #tpu.memory_space<vmem>>) attributes {dimension_semantics = [#tpu.dimension_semantics<parallel>], iteration_bounds = array<i64: 1>, scalar_prefetch = 0 : i64, scratch_operands = 0 : i64, tpu.core_type = #tpu.core_type<tc>, window_params = [{transform_indices = @transform_0, window_bounds = array<i64: 16, 128>}, {pipeline_mode = #tpu.pipeline_mode<synchronous>, transform_indices = @transform_1, window_bounds = array<i64: 128, 384>}, {pipeline_mode = #tpu.pipeline_mode<synchronous>, transform_indices = @transform_2, window_bounds = array<i64: 1, 384>}, {transform_indices = @transform_3, window_bounds = array<i64: 16, 384>}]} {
    %c0 = arith.constant 0 : index
    %c0_0 = arith.constant 0 : index
    %0 = vector.load %arg1[%c0, %c0_0] : memref<16x128xbf16, #tpu.memory_space<vmem>>, vector<16x128xbf16>
    %c0_1 = arith.constant 0 : index
    %c0_2 = arith.constant 0 : index
    %1 = vector.load %arg2[%c0_1, %c0_2] : memref<128x384xbf16, #tpu.memory_space<vmem>>, vector<128x384xbf16>
    %cst = arith.constant dense<0.000000e+00> : vector<16x384xf32>
    %2 = tpu.matmul %0, %1, %cst {dimension_numbers = #tpu.dot_dimension_numbers<[1], [0], [0], [1], [0, 0, 1, 1], [], []>} : vector<16x128xbf16>, vector<128x384xbf16>, vector<16x384xf32> -> vector<16x384xf32>
    %c0_3 = arith.constant 0 : index
    %c0_4 = arith.constant 0 : index
    %3 = vector.load %arg3[%c0_3, %c0_4] : memref<1x384xf32, #tpu.memory_space<vmem>>, vector<1x384xf32>
    %4 = vector.broadcast %3 : vector<1x384xf32> to vector<16x384xf32>
    %5 = arith.addf %2, %4 : vector<16x384xf32>
    %6 = arith.truncf %5 : vector<16x384xf32> to vector<16x384xbf16>
    %c0_5 = arith.constant 0 : index
    %c0_6 = arith.constant 0 : index
    %7 = vector.load %arg4[%c0_5, %c0_6] : memref<16x384xbf16, #tpu.memory_space<vmem>>, vector<16x384xbf16>
    tpu.vector_store %arg4[%c0_5, %c0_6], %6 {strides = array<i32>} : memref<16x384xbf16, #tpu.memory_space<vmem>>, vector<16x384xbf16>,
    return
  }
  func.func @transform_0(%arg0: i32) -> (i32, i32) {
    %c0_i32 = arith.constant 0 : i32
    %c0_i32_0 = arith.constant 0 : i32
    return %arg0, %c0_i32 : i32, i32
  }
  func.func @transform_1(%arg0: i32) -> (i32, i32) {
    %c0_i32 = arith.constant 0 : i32
    %c0_i32_0 = arith.constant 0 : i32
    %c0_i32_1 = arith.constant 0 : i32
    return %c0_i32, %c0_i32_0 : i32, i32
  }
  func.func @transform_2(%arg0: i32) -> (i32, i32) {
    %c0_i32 = arith.constant 0 : i32
    %c0_i32_0 = arith.constant 0 : i32
    %c0_i32_1 = arith.constant 0 : i32
    return %c0_i32, %c0_i32_0 : i32, i32
  }
  func.func @transform_3(%arg0: i32) -> (i32, i32) {
    %c0_i32 = arith.constant 0 : i32
    %c0_i32_0 = arith.constant 0 : i32
    return %arg0, %c0_i32 : i32, i32
  }
}

module attributes {stable_mosaic.version = 11 : i64} {
  func.func @attention_kernel(%arg0: i32, %arg1: i32, %arg2: memref<1x8x128xbf16, #tpu.memory_space<vmem>>, %arg3: memref<1x2x8x64xbf16, #tpu.memory_space<vmem>>, %arg4: memref<1x2x8x64xbf16, #tpu.memory_space<vmem>>, %arg5: memref<1x2x8x64xbf16, #tpu.memory_space<vmem>>, %arg6: memref<1x1x8xf32, #tpu.memory_space<vmem>>, %arg7: memref<128x128xbf16, #tpu.memory_space<vmem>>, %arg8: memref<1x128xf32, #tpu.memory_space<vmem>>, %arg9: memref<1x128xf32, #tpu.memory_space<vmem>>, %arg10: memref<1x128xf32, #tpu.memory_space<vmem>>, %arg11: memref<1x8x128xbf16, #tpu.memory_space<vmem>>) attributes {dimension_semantics = [#tpu.dimension_semantics<parallel>, #tpu.dimension_semantics<parallel>], iteration_bounds = array<i64: 2, 1>, scalar_prefetch = 0 : i64, scratch_operands = 0 : i64, tpu.core_type = #tpu.core_type<tc>, window_params = [{transform_indices = @transform_0, window_bounds = array<i64: 1, 8, 128>}, {transform_indices = @transform_1, window_bounds = array<i64: 1, 2, 8, 64>}, {transform_indices = @transform_2, window_bounds = array<i64: 1, 2, 8, 64>}, {transform_indices = @transform_3, window_bounds = array<i64: 1, 2, 8, 64>}, {transform_indices = @transform_4, window_bounds = array<i64: 1, 1, 8>}, {pipeline_mode = #tpu.pipeline_mode<synchronous>, transform_indices = @transform_5, window_bounds = array<i64: 128, 128>}, {pipeline_mode = #tpu.pipeline_mode<synchronous>, transform_indices = @transform_6, window_bounds = array<i64: 1, 128>}, {pipeline_mode = #tpu.pipeline_mode<synchronous>, transform_indices = @transform_7, window_bounds = array<i64: 1, 128>}, {pipeline_mode = #tpu.pipeline_mode<synchronous>, transform_indices = @transform_8, window_bounds = array<i64: 1, 128>}, {transform_indices = @transform_9, window_bounds = array<i64: 1, 8, 128>}]} {
    %c0 = arith.constant 0 : index
    %c0_0 = arith.constant 0 : index
    %c0_1 = arith.constant 0 : index
    %c0_2 = arith.constant 0 : index
    %0 = vector.load %arg3[%c0, %c0_0, %c0_1, %c0_2] : memref<1x2x8x64xbf16, #tpu.memory_space<vmem>>, vector<1x2x8x64xbf16>
    %1 = vector.shape_cast %0 : vector<1x2x8x64xbf16> to vector<2x8x64xbf16>
    %c0_3 = arith.constant 0 : index
    %c0_4 = arith.constant 0 : index
    %c0_5 = arith.constant 0 : index
    %c0_6 = arith.constant 0 : index
    %2 = vector.load %arg4[%c0_3, %c0_4, %c0_5, %c0_6] : memref<1x2x8x64xbf16, #tpu.memory_space<vmem>>, vector<1x2x8x64xbf16>
    %3 = vector.shape_cast %2 : vector<1x2x8x64xbf16> to vector<2x8x64xbf16>
    %c0_7 = arith.constant 0 : index
    %c0_8 = arith.constant 0 : index
    %c0_9 = arith.constant 0 : index
    %c0_10 = arith.constant 0 : index
    %4 = vector.load %arg5[%c0_7, %c0_8, %c0_9, %c0_10] : memref<1x2x8x64xbf16, #tpu.memory_space<vmem>>, vector<1x2x8x64xbf16>
    %5 = vector.shape_cast %4 : vector<1x2x8x64xbf16> to vector<2x8x64xbf16>
    %c0_11 = arith.constant 0 : index
    %c0_12 = arith.constant 0 : index
    %c0_13 = arith.constant 0 : index
    %6 = vector.load %arg6[%c0_11, %c0_12, %c0_13] : memref<1x1x8xf32, #tpu.memory_space<vmem>>, vector<1x1x8xf32>
    %cst = arith.constant 1.000000e+00 : f32
    %7 = vector.broadcast %cst : f32 to vector<1x1x8xf32>
    %8 = arith.subf %7, %6 : vector<1x1x8xf32>
    %cst_14 = arith.constant -1.000000e+09 : f32
    %9 = vector.broadcast %cst_14 : f32 to vector<1x1x8xf32>
    %10 = arith.mulf %8, %9 : vector<1x1x8xf32>
    "tpu.trace_start"() <{level = 10 : i32, message = "hqd,hkd->hqk"}> : () -> ()
    %cst_15 = arith.constant dense<0.000000e+00> : vector<2x8x8xf32>
    %11 = tpu.matmul %1, %3, %cst_15 {dimension_numbers = #tpu.dot_dimension_numbers<[2], [2], [1], [1], [0, 0, 0, 1, 1, 1], [0], [0]>} : vector<2x8x64xbf16>, vector<2x8x64xbf16>, vector<2x8x8xf32> -> vector<2x8x8xf32>
    "tpu.trace_stop"() : () -> ()
    %12 = vector.broadcast %10 : vector<1x1x8xf32> to vector<2x8x8xf32>
    %13 = arith.addf %11, %12 : vector<2x8x8xf32>
    %cst_16 = arith.constant dense<0xFF800000> : vector<2x8xf32>
    %14 = vector.multi_reduction <maximumf>, %13, %cst_16 [2] : vector<2x8x8xf32> to vector<2x8xf32>
    %15 = vector.shape_cast %14 : vector<2x8xf32> to vector<2x8x1xf32>
    %16 = vector.broadcast %15 : vector<2x8x1xf32> to vector<2x8x8xf32>
    %17 = arith.subf %13, %16 : vector<2x8x8xf32>
    %18 = arith.truncf %17 : vector<2x8x8xf32> to vector<2x8x8xbf16>
    %19 = math.exp %18 : vector<2x8x8xbf16>
    %20 = arith.extf %19 : vector<2x8x8xbf16> to vector<2x8x8xf32>
    %cst_17 = arith.constant dense<0.000000e+00> : vector<2x8xf32>
    %21 = vector.multi_reduction <add>, %20, %cst_17 [2] : vector<2x8x8xf32> to vector<2x8xf32>
    %22 = vector.shape_cast %21 : vector<2x8xf32> to vector<2x8x1xf32>
    "tpu.trace_start"() <{level = 10 : i32, message = "hqk,hkd->hqd"}> : () -> ()
    %cst_18 = arith.constant dense<0.000000e+00> : vector<2x8x64xf32>
    %23 = tpu.matmul %19, %5, %cst_18 {dimension_numbers = #tpu.dot_dimension_numbers<[2], [1], [1], [2], [0, 0, 0, 1, 1, 2], [0], [0]>} : vector<2x8x8xbf16>, vector<2x8x64xbf16>, vector<2x8x64xf32> -> vector<2x8x64xf32>
    "tpu.trace_stop"() : () -> ()
    %24 = tpu.reciprocal %22 {approx = true} : vector<2x8x1xf32> -> vector<2x8x1xf32>
    %25 = vector.broadcast %24 : vector<2x8x1xf32> to vector<2x8x64xf32>
    %26 = arith.mulf %23, %25 : vector<2x8x64xf32>
    %27 = arith.truncf %26 : vector<2x8x64xf32> to vector<2x8x64xbf16>
    %28 = tpu.transpose %27, [1, 0, 2] : vector<2x8x64xbf16> -> vector<8x2x64xbf16>
    %29 = vector.shape_cast %28 : vector<8x2x64xbf16> to vector<8x128xbf16>
    %c0_19 = arith.constant 0 : index
    %c0_20 = arith.constant 0 : index
    %30 = vector.load %arg7[%c0_19, %c0_20] : memref<128x128xbf16, #tpu.memory_space<vmem>>, vector<128x128xbf16>
    %cst_21 = arith.constant dense<0.000000e+00> : vector<8x128xf32>
    %31 = tpu.matmul %29, %30, %cst_21 {dimension_numbers = #tpu.dot_dimension_numbers<[1], [0], [0], [1], [0, 0, 1, 1], [], []>} : vector<8x128xbf16>, vector<128x128xbf16>, vector<8x128xf32> -> vector<8x128xf32>
    %c0_22 = arith.constant 0 : index
    %c0_23 = arith.constant 0 : index
    %32 = vector.load %arg8[%c0_22, %c0_23] : memref<1x128xf32, #tpu.memory_space<vmem>>, vector<1x128xf32>
    %33 = vector.broadcast %32 : vector<1x128xf32> to vector<8x128xf32>
    %34 = arith.addf %31, %33 : vector<8x128xf32>
    %c0_24 = arith.constant 0 : index
    %c0_25 = arith.constant 0 : index
    %c0_26 = arith.constant 0 : index
    %35 = vector.load %arg2[%c0_24, %c0_25, %c0_26] : memref<1x8x128xbf16, #tpu.memory_space<vmem>>, vector<1x8x128xbf16>
    %36 = vector.shape_cast %35 : vector<1x8x128xbf16> to vector<8x128xbf16>
    %37 = arith.extf %36 : vector<8x128xbf16> to vector<8x128xf32>
    %38 = arith.addf %37, %34 : vector<8x128xf32>
    %c0_27 = arith.constant 0 : index
    %c0_28 = arith.constant 0 : index
    %39 = vector.load %arg9[%c0_27, %c0_28] : memref<1x128xf32, #tpu.memory_space<vmem>>, vector<1x128xf32>
    %c0_29 = arith.constant 0 : index
    %c0_30 = arith.constant 0 : index
    %40 = vector.load %arg10[%c0_29, %c0_30] : memref<1x128xf32, #tpu.memory_space<vmem>>, vector<1x128xf32>
    %cst_31 = arith.constant dense<0.000000e+00> : vector<8xf32>
    %41 = vector.multi_reduction <add>, %38, %cst_31 [1] : vector<8x128xf32> to vector<8xf32>
    %42 = vector.shape_cast %41 : vector<8xf32> to vector<8x1xf32>
    %cst_32 = arith.constant 1.280000e+02 : f32
    %43 = vector.broadcast %cst_32 : f32 to vector<8x1xf32>
    %44 = arith.divf %42, %43 : vector<8x1xf32>
    %45 = vector.broadcast %44 : vector<8x1xf32> to vector<8x128xf32>
    %46 = arith.subf %38, %45 : vector<8x128xf32>
    %47 = arith.mulf %46, %46 : vector<8x128xf32>
    %cst_33 = arith.constant dense<0.000000e+00> : vector<8xf32>
    %48 = vector.multi_reduction <add>, %47, %cst_33 [1] : vector<8x128xf32> to vector<8xf32>
    %49 = vector.shape_cast %48 : vector<8xf32> to vector<8x1xf32>
    %cst_34 = arith.constant 1.280000e+02 : f32
    %50 = vector.broadcast %cst_34 : f32 to vector<8x1xf32>
    %51 = arith.divf %49, %50 : vector<8x1xf32>
    %52 = vector.broadcast %44 : vector<8x1xf32> to vector<8x128xf32>
    %53 = arith.subf %38, %52 : vector<8x128xf32>
    %cst_35 = arith.constant 9.99999996E-13 : f32
    %54 = vector.broadcast %cst_35 : f32 to vector<8x1xf32>
    %55 = arith.addf %51, %54 : vector<8x1xf32>
    %56 = math.rsqrt %55 : vector<8x1xf32>
    %57 = vector.broadcast %56 : vector<8x1xf32> to vector<8x128xf32>
    %58 = arith.mulf %53, %57 : vector<8x128xf32>
    %59 = vector.broadcast %39 : vector<1x128xf32> to vector<8x128xf32>
    %60 = arith.mulf %58, %59 : vector<8x128xf32>
    %61 = vector.broadcast %40 : vector<1x128xf32> to vector<8x128xf32>
    %62 = arith.addf %60, %61 : vector<8x128xf32>
    %63 = arith.truncf %62 : vector<8x128xf32> to vector<8x128xbf16>
    %c0_36 = arith.constant 0 : index
    %c0_37 = arith.constant 0 : index
    %c0_38 = arith.constant 0 : index
    %64 = vector.load %arg11[%c0_36, %c0_37, %c0_38] : memref<1x8x128xbf16, #tpu.memory_space<vmem>>, vector<1x8x128xbf16>
    %65 = vector.shape_cast %64 : vector<1x8x128xbf16> to vector<8x128xbf16>
    %66 = vector.shape_cast %63 : vector<8x128xbf16> to vector<1x8x128xbf16>
    tpu.vector_store %arg11[%c0_36, %c0_37, %c0_38], %66 {strides = array<i32>} : memref<1x8x128xbf16, #tpu.memory_space<vmem>>, vector<1x8x128xbf16>,
    return
  }
  func.func @transform_0(%arg0: i32, %arg1: i32) -> (i32, i32, i32) {
    %c0_i32 = arith.constant 0 : i32
    %c0_i32_0 = arith.constant 0 : i32
    return %arg0, %arg1, %c0_i32 : i32, i32, i32
  }
  func.func @transform_1(%arg0: i32, %arg1: i32) -> (i32, i32, i32, i32) {
    %c0_i32 = arith.constant 0 : i32
    %c0_i32_0 = arith.constant 0 : i32
    %c0_i32_1 = arith.constant 0 : i32
    return %arg0, %c0_i32, %arg1, %c0_i32_0 : i32, i32, i32, i32
  }
  func.func @transform_2(%arg0: i32, %arg1: i32) -> (i32, i32, i32, i32) {
    %c0_i32 = arith.constant 0 : i32
    %c0_i32_0 = arith.constant 0 : i32
    %c0_i32_1 = arith.constant 0 : i32
    %c0_i32_2 = arith.constant 0 : i32
    return %arg0, %c0_i32, %c0_i32_0, %c0_i32_1 : i32, i32, i32, i32
  }
  func.func @transform_3(%arg0: i32, %arg1: i32) -> (i32, i32, i32, i32) {
    %c0_i32 = arith.constant 0 : i32
    %c0_i32_0 = arith.constant 0 : i32
    %c0_i32_1 = arith.constant 0 : i32
    %c0_i32_2 = arith.constant 0 : i32
    return %arg0, %c0_i32, %c0_i32_0, %c0_i32_1 : i32, i32, i32, i32
  }
  func.func @transform_4(%arg0: i32, %arg1: i32) -> (i32, i32, i32) {
    %c0_i32 = arith.constant 0 : i32
    %c0_i32_0 = arith.constant 0 : i32
    %c0_i32_1 = arith.constant 0 : i32
    return %arg0, %c0_i32, %c0_i32_0 : i32, i32, i32
  }
  func.func @transform_5(%arg0: i32, %arg1: i32) -> (i32, i32) {
    %c0_i32 = arith.constant 0 : i32
    %c0_i32_0 = arith.constant 0 : i32
    %c0_i32_1 = arith.constant 0 : i32
    return %c0_i32, %c0_i32_0 : i32, i32
  }
  func.func @transform_6(%arg0: i32, %arg1: i32) -> (i32, i32) {
    %c0_i32 = arith.constant 0 : i32
    %c0_i32_0 = arith.constant 0 : i32
    %c0_i32_1 = arith.constant 0 : i32
    return %c0_i32, %c0_i32_0 : i32, i32
  }
  func.func @transform_7(%arg0: i32, %arg1: i32) -> (i32, i32) {
    %c0_i32 = arith.constant 0 : i32
    %c0_i32_0 = arith.constant 0 : i32
    %c0_i32_1 = arith.constant 0 : i32
    return %c0_i32, %c0_i32_0 : i32, i32
  }
  func.func @transform_8(%arg0: i32, %arg1: i32) -> (i32, i32) {
    %c0_i32 = arith.constant 0 : i32
    %c0_i32_0 = arith.constant 0 : i32
    %c0_i32_1 = arith.constant 0 : i32
    return %c0_i32, %c0_i32_0 : i32, i32
  }
  func.func @transform_9(%arg0: i32, %arg1: i32) -> (i32, i32, i32) {
    %c0_i32 = arith.constant 0 : i32
    %c0_i32_0 = arith.constant 0 : i32
    return %arg0, %arg1, %c0_i32 : i32, i32, i32
  }
}

module attributes {stable_mosaic.version = 11 : i64} {
  func.func @ffn_kernel(%arg0: i32, %arg1: i32, %arg2: memref<16x128xbf16, #tpu.memory_space<vmem>>, %arg3: memref<128x512xbf16, #tpu.memory_space<vmem>>, %arg4: memref<1x512xf32, #tpu.memory_space<vmem>>, %arg5: memref<512x128xbf16, #tpu.memory_space<vmem>>, %arg6: memref<1x128xf32, #tpu.memory_space<vmem>>, %arg7: memref<1x128xf32, #tpu.memory_space<vmem>>, %arg8: memref<1x128xf32, #tpu.memory_space<vmem>>, %arg9: memref<16x128xbf16, #tpu.memory_space<vmem>>, %arg10: memref<16x128xf32, #tpu.memory_space<vmem>>) attributes {dimension_semantics = [#tpu.dimension_semantics<parallel>, #tpu.dimension_semantics<arbitrary>], iteration_bounds = array<i64: 1, 1>, scalar_prefetch = 0 : i64, scratch_operands = 1 : i64, tpu.core_type = #tpu.core_type<tc>, window_params = [{transform_indices = @transform_0, window_bounds = array<i64: 16, 128>}, {transform_indices = @transform_1, window_bounds = array<i64: 128, 512>}, {transform_indices = @transform_2, window_bounds = array<i64: 1, 512>}, {transform_indices = @transform_3, window_bounds = array<i64: 512, 128>}, {pipeline_mode = #tpu.pipeline_mode<synchronous>, transform_indices = @transform_4, window_bounds = array<i64: 1, 128>}, {pipeline_mode = #tpu.pipeline_mode<synchronous>, transform_indices = @transform_5, window_bounds = array<i64: 1, 128>}, {pipeline_mode = #tpu.pipeline_mode<synchronous>, transform_indices = @transform_6, window_bounds = array<i64: 1, 128>}, {transform_indices = @transform_7, window_bounds = array<i64: 16, 128>}]} {
    %c0_i32 = arith.constant 0 : i32
    %0 = arith.cmpi eq, %arg1, %c0_i32 : i32
    %1 = arith.extui %0 : i1 to i32
    %c0_i32_0 = arith.constant 0 : i32
    %2 = arith.cmpi ne, %1, %c0_i32_0 : i32
    scf.if %2 {
      %cst_19 = arith.constant 0.000000e+00 : f32
      %31 = vector.broadcast %cst_19 : f32 to vector<16x128xf32>
      %c0_20 = arith.constant 0 : index
      %c0_21 = arith.constant 0 : index
      %32 = vector.load %arg10[%c0_20, %c0_21] : memref<16x128xf32, #tpu.memory_space<vmem>>, vector<16x128xf32>
      tpu.vector_store %arg10[%c0_20, %c0_21], %31 {strides = array<i32>} : memref<16x128xf32, #tpu.memory_space<vmem>>, vector<16x128xf32>,
    } else {
    }
    %c0 = arith.constant 0 : index
    %c0_1 = arith.constant 0 : index
    %3 = vector.load %arg2[%c0, %c0_1] : memref<16x128xbf16, #tpu.memory_space<vmem>>, vector<16x128xbf16>
    %c0_2 = arith.constant 0 : index
    %c0_3 = arith.constant 0 : index
    %4 = vector.load %arg3[%c0_2, %c0_3] : memref<128x512xbf16, #tpu.memory_space<vmem>>, vector<128x512xbf16>
    %cst = arith.constant dense<0.000000e+00> : vector<16x512xf32>
    %5 = tpu.matmul %3, %4, %cst {dimension_numbers = #tpu.dot_dimension_numbers<[1], [0], [0], [1], [0, 0, 1, 1], [], []>} : vector<16x128xbf16>, vector<128x512xbf16>, vector<16x512xf32> -> vector<16x512xf32>
    %c0_4 = arith.constant 0 : index
    %c0_5 = arith.constant 0 : index
    %6 = vector.load %arg4[%c0_4, %c0_5] : memref<1x512xf32, #tpu.memory_space<vmem>>, vector<1x512xf32>
    %7 = vector.broadcast %6 : vector<1x512xf32> to vector<16x512xf32>
    %8 = arith.addf %5, %7 : vector<16x512xf32>
    %9 = arith.mulf %8, %8 : vector<16x512xf32>
    %10 = arith.mulf %8, %9 : vector<16x512xf32>
    %cst_6 = arith.constant 4.471500e-02 : f32
    %11 = vector.broadcast %cst_6 : f32 to vector<16x512xf32>
    %12 = arith.mulf %11, %10 : vector<16x512xf32>
    %13 = arith.addf %8, %12 : vector<16x512xf32>
    %cst_7 = arith.constant 0.797884583 : f32
    %14 = vector.broadcast %cst_7 : f32 to vector<16x512xf32>
    %15 = arith.mulf %14, %13 : vector<16x512xf32>
    %16 = math.tanh %15 : vector<16x512xf32>
    %cst_8 = arith.constant 1.000000e+00 : f32
    %17 = vector.broadcast %cst_8 : f32 to vector<16x512xf32>
    %18 = arith.addf %17, %16 : vector<16x512xf32>
    %cst_9 = arith.constant 5.000000e-01 : f32
    %19 = vector.broadcast %cst_9 : f32 to vector<16x512xf32>
    %20 = arith.mulf %19, %18 : vector<16x512xf32>
    %21 = arith.mulf %8, %20 : vector<16x512xf32>
    %c0_10 = arith.constant 0 : index
    %c0_11 = arith.constant 0 : index
    %22 = vector.load %arg10[%c0_10, %c0_11] : memref<16x128xf32, #tpu.memory_space<vmem>>, vector<16x128xf32>
    %23 = arith.truncf %21 : vector<16x512xf32> to vector<16x512xbf16>
    %c0_12 = arith.constant 0 : index
    %c0_13 = arith.constant 0 : index
    %24 = vector.load %arg5[%c0_12, %c0_13] : memref<512x128xbf16, #tpu.memory_space<vmem>>, vector<512x128xbf16>
    %cst_14 = arith.constant dense<0.000000e+00> : vector<16x128xf32>
    %25 = tpu.matmul %23, %24, %cst_14 {dimension_numbers = #tpu.dot_dimension_numbers<[1], [0], [0], [1], [0, 0, 1, 1], [], []>} : vector<16x512xbf16>, vector<512x128xbf16>, vector<16x128xf32> -> vector<16x128xf32>
    %26 = arith.addf %22, %25 : vector<16x128xf32>
    %c0_15 = arith.constant 0 : index
    %c0_16 = arith.constant 0 : index
    %27 = vector.load %arg10[%c0_15, %c0_16] : memref<16x128xf32, #tpu.memory_space<vmem>>, vector<16x128xf32>
    tpu.vector_store %arg10[%c0_15, %c0_16], %26 {strides = array<i32>} : memref<16x128xf32, #tpu.memory_space<vmem>>, vector<16x128xf32>,
    %c0_i32_17 = arith.constant 0 : i32
    %28 = arith.cmpi eq, %arg1, %c0_i32_17 : i32
    %29 = arith.extui %28 : i1 to i32
    %c0_i32_18 = arith.constant 0 : i32
    %30 = arith.cmpi ne, %29, %c0_i32_18 : i32
    scf.if %30 {
      %c0_19 = arith.constant 0 : index
      %c0_20 = arith.constant 0 : index
      %31 = vector.load %arg10[%c0_19, %c0_20] : memref<16x128xf32, #tpu.memory_space<vmem>>, vector<16x128xf32>
      %c0_21 = arith.constant 0 : index
      %c0_22 = arith.constant 0 : index
      %32 = vector.load %arg6[%c0_21, %c0_22] : memref<1x128xf32, #tpu.memory_space<vmem>>, vector<1x128xf32>
      %33 = vector.broadcast %32 : vector<1x128xf32> to vector<16x128xf32>
      %34 = arith.addf %31, %33 : vector<16x128xf32>
      %c0_23 = arith.constant 0 : index
      %c0_24 = arith.constant 0 : index
      %35 = vector.load %arg2[%c0_23, %c0_24] : memref<16x128xbf16, #tpu.memory_space<vmem>>, vector<16x128xbf16>
      %36 = arith.extf %35 : vector<16x128xbf16> to vector<16x128xf32>
      %37 = arith.addf %36, %34 : vector<16x128xf32>
      %c0_25 = arith.constant 0 : index
      %c0_26 = arith.constant 0 : index
      %38 = vector.load %arg7[%c0_25, %c0_26] : memref<1x128xf32, #tpu.memory_space<vmem>>, vector<1x128xf32>
      %c0_27 = arith.constant 0 : index
      %c0_28 = arith.constant 0 : index
      %39 = vector.load %arg8[%c0_27, %c0_28] : memref<1x128xf32, #tpu.memory_space<vmem>>, vector<1x128xf32>
      %cst_29 = arith.constant dense<0.000000e+00> : vector<16xf32>
      %40 = vector.multi_reduction <add>, %37, %cst_29 [1] : vector<16x128xf32> to vector<16xf32>
      %41 = vector.shape_cast %40 : vector<16xf32> to vector<16x1xf32>
      %cst_30 = arith.constant 1.280000e+02 : f32
      %42 = vector.broadcast %cst_30 : f32 to vector<16x1xf32>
      %43 = arith.divf %41, %42 : vector<16x1xf32>
      %44 = vector.broadcast %43 : vector<16x1xf32> to vector<16x128xf32>
      %45 = arith.subf %37, %44 : vector<16x128xf32>
      %46 = arith.mulf %45, %45 : vector<16x128xf32>
      %cst_31 = arith.constant dense<0.000000e+00> : vector<16xf32>
      %47 = vector.multi_reduction <add>, %46, %cst_31 [1] : vector<16x128xf32> to vector<16xf32>
      %48 = vector.shape_cast %47 : vector<16xf32> to vector<16x1xf32>
      %cst_32 = arith.constant 1.280000e+02 : f32
      %49 = vector.broadcast %cst_32 : f32 to vector<16x1xf32>
      %50 = arith.divf %48, %49 : vector<16x1xf32>
      %51 = vector.broadcast %43 : vector<16x1xf32> to vector<16x128xf32>
      %52 = arith.subf %37, %51 : vector<16x128xf32>
      %cst_33 = arith.constant 9.99999996E-13 : f32
      %53 = vector.broadcast %cst_33 : f32 to vector<16x1xf32>
      %54 = arith.addf %50, %53 : vector<16x1xf32>
      %55 = math.rsqrt %54 : vector<16x1xf32>
      %56 = vector.broadcast %55 : vector<16x1xf32> to vector<16x128xf32>
      %57 = arith.mulf %52, %56 : vector<16x128xf32>
      %58 = vector.broadcast %38 : vector<1x128xf32> to vector<16x128xf32>
      %59 = arith.mulf %57, %58 : vector<16x128xf32>
      %60 = vector.broadcast %39 : vector<1x128xf32> to vector<16x128xf32>
      %61 = arith.addf %59, %60 : vector<16x128xf32>
      %62 = arith.truncf %61 : vector<16x128xf32> to vector<16x128xbf16>
      %c0_34 = arith.constant 0 : index
      %c0_35 = arith.constant 0 : index
      %63 = vector.load %arg9[%c0_34, %c0_35] : memref<16x128xbf16, #tpu.memory_space<vmem>>, vector<16x128xbf16>
      tpu.vector_store %arg9[%c0_34, %c0_35], %62 {strides = array<i32>} : memref<16x128xbf16, #tpu.memory_space<vmem>>, vector<16x128xbf16>,
    } else {
    }
    return
  }
  func.func @transform_0(%arg0: i32, %arg1: i32) -> (i32, i32) {
    %c0_i32 = arith.constant 0 : i32
    %c0_i32_0 = arith.constant 0 : i32
    return %arg0, %c0_i32 : i32, i32
  }
  func.func @transform_1(%arg0: i32, %arg1: i32) -> (i32, i32) {
    %c0_i32 = arith.constant 0 : i32
    %c0_i32_0 = arith.constant 0 : i32
    return %c0_i32, %arg1 : i32, i32
  }
  func.func @transform_2(%arg0: i32, %arg1: i32) -> (i32, i32) {
    %c0_i32 = arith.constant 0 : i32
    %c0_i32_0 = arith.constant 0 : i32
    return %c0_i32, %arg1 : i32, i32
  }
  func.func @transform_3(%arg0: i32, %arg1: i32) -> (i32, i32) {
    %c0_i32 = arith.constant 0 : i32
    %c0_i32_0 = arith.constant 0 : i32
    return %arg1, %c0_i32 : i32, i32
  }
  func.func @transform_4(%arg0: i32, %arg1: i32) -> (i32, i32) {
    %c0_i32 = arith.constant 0 : i32
    %c0_i32_0 = arith.constant 0 : i32
    %c0_i32_1 = arith.constant 0 : i32
    return %c0_i32, %c0_i32_0 : i32, i32
  }
  func.func @transform_5(%arg0: i32, %arg1: i32) -> (i32, i32) {
    %c0_i32 = arith.constant 0 : i32
    %c0_i32_0 = arith.constant 0 : i32
    %c0_i32_1 = arith.constant 0 : i32
    return %c0_i32, %c0_i32_0 : i32, i32
  }
  func.func @transform_6(%arg0: i32, %arg1: i32) -> (i32, i32) {
    %c0_i32 = arith.constant 0 : i32
    %c0_i32_0 = arith.constant 0 : i32
    %c0_i32_1 = arith.constant 0 : i32
    return %c0_i32, %c0_i32_0 : i32, i32
  }
  func.func @transform_7(%arg0: i32, %arg1: i32) -> (i32, i32) {
    %c0_i32 = arith.constant 0 : i32
    %c0_i32_0 = arith.constant 0 : i32
    return %arg0, %c0_i32 : i32, i32
  }
}

module attributes {stable_mosaic.version = 11 : i64} {
  func.func @qkv_kernel(%arg0: i32, %arg1: memref<16x128xbf16, #tpu.memory_space<vmem>>, %arg2: memref<128x384xbf16, #tpu.memory_space<vmem>>, %arg3: memref<1x384xf32, #tpu.memory_space<vmem>>, %arg4: memref<16x384xbf16, #tpu.memory_space<vmem>>) attributes {dimension_semantics = [#tpu.dimension_semantics<parallel>], iteration_bounds = array<i64: 1>, scalar_prefetch = 0 : i64, scratch_operands = 0 : i64, tpu.core_type = #tpu.core_type<tc>, window_params = [{transform_indices = @transform_0, window_bounds = array<i64: 16, 128>}, {pipeline_mode = #tpu.pipeline_mode<synchronous>, transform_indices = @transform_1, window_bounds = array<i64: 128, 384>}, {pipeline_mode = #tpu.pipeline_mode<synchronous>, transform_indices = @transform_2, window_bounds = array<i64: 1, 384>}, {transform_indices = @transform_3, window_bounds = array<i64: 16, 384>}]} {
    %c0 = arith.constant 0 : index
    %c0_0 = arith.constant 0 : index
    %0 = vector.load %arg1[%c0, %c0_0] : memref<16x128xbf16, #tpu.memory_space<vmem>>, vector<16x128xbf16>
    %c0_1 = arith.constant 0 : index
    %c0_2 = arith.constant 0 : index
    %1 = vector.load %arg2[%c0_1, %c0_2] : memref<128x384xbf16, #tpu.memory_space<vmem>>, vector<128x384xbf16>
    %cst = arith.constant dense<0.000000e+00> : vector<16x384xf32>
    %2 = tpu.matmul %0, %1, %cst {dimension_numbers = #tpu.dot_dimension_numbers<[1], [0], [0], [1], [0, 0, 1, 1], [], []>} : vector<16x128xbf16>, vector<128x384xbf16>, vector<16x384xf32> -> vector<16x384xf32>
    %c0_3 = arith.constant 0 : index
    %c0_4 = arith.constant 0 : index
    %3 = vector.load %arg3[%c0_3, %c0_4] : memref<1x384xf32, #tpu.memory_space<vmem>>, vector<1x384xf32>
    %4 = vector.broadcast %3 : vector<1x384xf32> to vector<16x384xf32>
    %5 = arith.addf %2, %4 : vector<16x384xf32>
    %6 = arith.truncf %5 : vector<16x384xf32> to vector<16x384xbf16>
    %c0_5 = arith.constant 0 : index
    %c0_6 = arith.constant 0 : index
    %7 = vector.load %arg4[%c0_5, %c0_6] : memref<16x384xbf16, #tpu.memory_space<vmem>>, vector<16x384xbf16>
    tpu.vector_store %arg4[%c0_5, %c0_6], %6 {strides = array<i32>} : memref<16x384xbf16, #tpu.memory_space<vmem>>, vector<16x384xbf16>,
    return
  }
  func.func @transform_0(%arg0: i32) -> (i32, i32) {
    %c0_i32 = arith.constant 0 : i32
    %c0_i32_0 = arith.constant 0 : i32
    return %arg0, %c0_i32 : i32, i32
  }
  func.func @transform_1(%arg0: i32) -> (i32, i32) {
    %c0_i32 = arith.constant 0 : i32
    %c0_i32_0 = arith.constant 0 : i32
    %c0_i32_1 = arith.constant 0 : i32
    return %c0_i32, %c0_i32_0 : i32, i32
  }
  func.func @transform_2(%arg0: i32) -> (i32, i32) {
    %c0_i32 = arith.constant 0 : i32
    %c0_i32_0 = arith.constant 0 : i32
    %c0_i32_1 = arith.constant 0 : i32
    return %c0_i32, %c0_i32_0 : i32, i32
  }
  func.func @transform_3(%arg0: i32) -> (i32, i32) {
    %c0_i32 = arith.constant 0 : i32
    %c0_i32_0 = arith.constant 0 : i32
    return %arg0, %c0_i32 : i32, i32
  }
}

module attributes {stable_mosaic.version = 11 : i64} {
  func.func @classifier_kernel(%arg0: i32, %arg1: memref<2x128xbf16, #tpu.memory_space<vmem>>, %arg2: memref<128x128xbf16, #tpu.memory_space<vmem>>, %arg3: memref<1x128xf32, #tpu.memory_space<vmem>>, %arg4: memref<2x128xf32, #tpu.memory_space<vmem>>) attributes {dimension_semantics = [#tpu.dimension_semantics<arbitrary>], iteration_bounds = array<i64: 1>, scalar_prefetch = 0 : i64, scratch_operands = 0 : i64, tpu.core_type = #tpu.core_type<tc>, window_params = [{pipeline_mode = #tpu.pipeline_mode<synchronous>, transform_indices = @transform_0, window_bounds = array<i64: 2, 128>}, {pipeline_mode = #tpu.pipeline_mode<synchronous>, transform_indices = @transform_1, window_bounds = array<i64: 128, 128>}, {pipeline_mode = #tpu.pipeline_mode<synchronous>, transform_indices = @transform_2, window_bounds = array<i64: 1, 128>}, {pipeline_mode = #tpu.pipeline_mode<synchronous>, transform_indices = @transform_3, window_bounds = array<i64: 2, 128>}]} {
    %c0 = arith.constant 0 : index
    %c0_0 = arith.constant 0 : index
    %0 = vector.load %arg1[%c0, %c0_0] : memref<2x128xbf16, #tpu.memory_space<vmem>>, vector<2x128xbf16>
    %c0_1 = arith.constant 0 : index
    %c0_2 = arith.constant 0 : index
    %1 = vector.load %arg2[%c0_1, %c0_2] : memref<128x128xbf16, #tpu.memory_space<vmem>>, vector<128x128xbf16>
    %cst = arith.constant dense<0.000000e+00> : vector<2x128xf32>
    %2 = tpu.matmul %0, %1, %cst {dimension_numbers = #tpu.dot_dimension_numbers<[1], [0], [0], [1], [0, 0, 1, 1], [], []>} : vector<2x128xbf16>, vector<128x128xbf16>, vector<2x128xf32> -> vector<2x128xf32>
    %c0_3 = arith.constant 0 : index
    %c0_4 = arith.constant 0 : index
    %3 = vector.load %arg3[%c0_3, %c0_4] : memref<1x128xf32, #tpu.memory_space<vmem>>, vector<1x128xf32>
    %4 = vector.broadcast %3 : vector<1x128xf32> to vector<2x128xf32>
    %5 = arith.addf %2, %4 : vector<2x128xf32>
    %c0_5 = arith.constant 0 : index
    %c0_6 = arith.constant 0 : index
    %6 = vector.load %arg4[%c0_5, %c0_6] : memref<2x128xf32, #tpu.memory_space<vmem>>, vector<2x128xf32>
    tpu.vector_store %arg4[%c0_5, %c0_6], %5 {strides = array<i32>} : memref<2x128xf32, #tpu.memory_space<vmem>>, vector<2x128xf32>,
    return
  }
  func.func @transform_0(%arg0: i32) -> (i32, i32) {
    %c0_i32 = arith.constant 0 : i32
    %c0_i32_0 = arith.constant 0 : i32
    %c0_i32_1 = arith.constant 0 : i32
    return %c0_i32, %c0_i32_0 : i32, i32
  }
  func.func @transform_1(%arg0: i32) -> (i32, i32) {
    %c0_i32 = arith.constant 0 : i32
    %c0_i32_0 = arith.constant 0 : i32
    %c0_i32_1 = arith.constant 0 : i32
    return %c0_i32, %c0_i32_0 : i32, i32
  }
  func.func @transform_2(%arg0: i32) -> (i32, i32) {
    %c0_i32 = arith.constant 0 : i32
    %c0_i32_0 = arith.constant 0 : i32
    %c0_i32_1 = arith.constant 0 : i32
    return %c0_i32, %c0_i32_0 : i32, i32
  }
  func.func @transform_3(%arg0: i32) -> (i32, i32) {
    %c0_i32 = arith.constant 0 : i32
    %c0_i32_0 = arith.constant 0 : i32
    %c0_i32_1 = arith.constant 0 : i32
    return %c0_i32, %c0_i32_0 : i32, i32
  }
}

module attributes {stable_mosaic.version = 11 : i64} {
  func.func @attention_kernel(%arg0: i32, %arg1: i32, %arg2: memref<1x8x128xbf16, #tpu.memory_space<vmem>>, %arg3: memref<1x2x8x64xbf16, #tpu.memory_space<vmem>>, %arg4: memref<1x2x8x64xbf16, #tpu.memory_space<vmem>>, %arg5: memref<1x2x8x64xbf16, #tpu.memory_space<vmem>>, %arg6: memref<1x1x8xf32, #tpu.memory_space<vmem>>, %arg7: memref<128x128xbf16, #tpu.memory_space<vmem>>, %arg8: memref<1x128xf32, #tpu.memory_space<vmem>>, %arg9: memref<1x128xf32, #tpu.memory_space<vmem>>, %arg10: memref<1x128xf32, #tpu.memory_space<vmem>>, %arg11: memref<1x8x128xbf16, #tpu.memory_space<vmem>>) attributes {dimension_semantics = [#tpu.dimension_semantics<parallel>, #tpu.dimension_semantics<parallel>], iteration_bounds = array<i64: 2, 1>, scalar_prefetch = 0 : i64, scratch_operands = 0 : i64, tpu.core_type = #tpu.core_type<tc>, window_params = [{transform_indices = @transform_0, window_bounds = array<i64: 1, 8, 128>}, {transform_indices = @transform_1, window_bounds = array<i64: 1, 2, 8, 64>}, {transform_indices = @transform_2, window_bounds = array<i64: 1, 2, 8, 64>}, {transform_indices = @transform_3, window_bounds = array<i64: 1, 2, 8, 64>}, {transform_indices = @transform_4, window_bounds = array<i64: 1, 1, 8>}, {pipeline_mode = #tpu.pipeline_mode<synchronous>, transform_indices = @transform_5, window_bounds = array<i64: 128, 128>}, {pipeline_mode = #tpu.pipeline_mode<synchronous>, transform_indices = @transform_6, window_bounds = array<i64: 1, 128>}, {pipeline_mode = #tpu.pipeline_mode<synchronous>, transform_indices = @transform_7, window_bounds = array<i64: 1, 128>}, {pipeline_mode = #tpu.pipeline_mode<synchronous>, transform_indices = @transform_8, window_bounds = array<i64: 1, 128>}, {transform_indices = @transform_9, window_bounds = array<i64: 1, 8, 128>}]} {
    %c0 = arith.constant 0 : index
    %c0_0 = arith.constant 0 : index
    %c0_1 = arith.constant 0 : index
    %c0_2 = arith.constant 0 : index
    %0 = vector.load %arg3[%c0, %c0_0, %c0_1, %c0_2] : memref<1x2x8x64xbf16, #tpu.memory_space<vmem>>, vector<1x2x8x64xbf16>
    %1 = vector.shape_cast %0 : vector<1x2x8x64xbf16> to vector<2x8x64xbf16>
    %c0_3 = arith.constant 0 : index
    %c0_4 = arith.constant 0 : index
    %c0_5 = arith.constant 0 : index
    %c0_6 = arith.constant 0 : index
    %2 = vector.load %arg4[%c0_3, %c0_4, %c0_5, %c0_6] : memref<1x2x8x64xbf16, #tpu.memory_space<vmem>>, vector<1x2x8x64xbf16>
    %3 = vector.shape_cast %2 : vector<1x2x8x64xbf16> to vector<2x8x64xbf16>
    %c0_7 = arith.constant 0 : index
    %c0_8 = arith.constant 0 : index
    %c0_9 = arith.constant 0 : index
    %c0_10 = arith.constant 0 : index
    %4 = vector.load %arg5[%c0_7, %c0_8, %c0_9, %c0_10] : memref<1x2x8x64xbf16, #tpu.memory_space<vmem>>, vector<1x2x8x64xbf16>
    %5 = vector.shape_cast %4 : vector<1x2x8x64xbf16> to vector<2x8x64xbf16>
    %c0_11 = arith.constant 0 : index
    %c0_12 = arith.constant 0 : index
    %c0_13 = arith.constant 0 : index
    %6 = vector.load %arg6[%c0_11, %c0_12, %c0_13] : memref<1x1x8xf32, #tpu.memory_space<vmem>>, vector<1x1x8xf32>
    %cst = arith.constant 1.000000e+00 : f32
    %7 = vector.broadcast %cst : f32 to vector<1x1x8xf32>
    %8 = arith.subf %7, %6 : vector<1x1x8xf32>
    %cst_14 = arith.constant -1.000000e+09 : f32
    %9 = vector.broadcast %cst_14 : f32 to vector<1x1x8xf32>
    %10 = arith.mulf %8, %9 : vector<1x1x8xf32>
    "tpu.trace_start"() <{level = 10 : i32, message = "hqd,hkd->hqk"}> : () -> ()
    %cst_15 = arith.constant dense<0.000000e+00> : vector<2x8x8xf32>
    %11 = tpu.matmul %1, %3, %cst_15 {dimension_numbers = #tpu.dot_dimension_numbers<[2], [2], [1], [1], [0, 0, 0, 1, 1, 1], [0], [0]>} : vector<2x8x64xbf16>, vector<2x8x64xbf16>, vector<2x8x8xf32> -> vector<2x8x8xf32>
    "tpu.trace_stop"() : () -> ()
    %12 = vector.broadcast %10 : vector<1x1x8xf32> to vector<2x8x8xf32>
    %13 = arith.addf %11, %12 : vector<2x8x8xf32>
    %cst_16 = arith.constant dense<0xFF800000> : vector<2x8xf32>
    %14 = vector.multi_reduction <maximumf>, %13, %cst_16 [2] : vector<2x8x8xf32> to vector<2x8xf32>
    %15 = vector.shape_cast %14 : vector<2x8xf32> to vector<2x8x1xf32>
    %16 = vector.broadcast %15 : vector<2x8x1xf32> to vector<2x8x8xf32>
    %17 = arith.subf %13, %16 : vector<2x8x8xf32>
    %18 = arith.truncf %17 : vector<2x8x8xf32> to vector<2x8x8xbf16>
    %19 = math.exp %18 : vector<2x8x8xbf16>
    %20 = arith.extf %19 : vector<2x8x8xbf16> to vector<2x8x8xf32>
    %cst_17 = arith.constant dense<0.000000e+00> : vector<2x8xf32>
    %21 = vector.multi_reduction <add>, %20, %cst_17 [2] : vector<2x8x8xf32> to vector<2x8xf32>
    %22 = vector.shape_cast %21 : vector<2x8xf32> to vector<2x8x1xf32>
    "tpu.trace_start"() <{level = 10 : i32, message = "hqk,hkd->hqd"}> : () -> ()
    %cst_18 = arith.constant dense<0.000000e+00> : vector<2x8x64xf32>
    %23 = tpu.matmul %19, %5, %cst_18 {dimension_numbers = #tpu.dot_dimension_numbers<[2], [1], [1], [2], [0, 0, 0, 1, 1, 2], [0], [0]>} : vector<2x8x8xbf16>, vector<2x8x64xbf16>, vector<2x8x64xf32> -> vector<2x8x64xf32>
    "tpu.trace_stop"() : () -> ()
    %24 = tpu.reciprocal %22 {approx = true} : vector<2x8x1xf32> -> vector<2x8x1xf32>
    %25 = vector.broadcast %24 : vector<2x8x1xf32> to vector<2x8x64xf32>
    %26 = arith.mulf %23, %25 : vector<2x8x64xf32>
    %27 = arith.truncf %26 : vector<2x8x64xf32> to vector<2x8x64xbf16>
    %28 = tpu.transpose %27, [1, 0, 2] : vector<2x8x64xbf16> -> vector<8x2x64xbf16>
    %29 = vector.shape_cast %28 : vector<8x2x64xbf16> to vector<8x128xbf16>
    %c0_19 = arith.constant 0 : index
    %c0_20 = arith.constant 0 : index
    %30 = vector.load %arg7[%c0_19, %c0_20] : memref<128x128xbf16, #tpu.memory_space<vmem>>, vector<128x128xbf16>
    %cst_21 = arith.constant dense<0.000000e+00> : vector<8x128xf32>
    %31 = tpu.matmul %29, %30, %cst_21 {dimension_numbers = #tpu.dot_dimension_numbers<[1], [0], [0], [1], [0, 0, 1, 1], [], []>} : vector<8x128xbf16>, vector<128x128xbf16>, vector<8x128xf32> -> vector<8x128xf32>
    %c0_22 = arith.constant 0 : index
    %c0_23 = arith.constant 0 : index
    %32 = vector.load %arg8[%c0_22, %c0_23] : memref<1x128xf32, #tpu.memory_space<vmem>>, vector<1x128xf32>
    %33 = vector.broadcast %32 : vector<1x128xf32> to vector<8x128xf32>
    %34 = arith.addf %31, %33 : vector<8x128xf32>
    %c0_24 = arith.constant 0 : index
    %c0_25 = arith.constant 0 : index
    %c0_26 = arith.constant 0 : index
    %35 = vector.load %arg2[%c0_24, %c0_25, %c0_26] : memref<1x8x128xbf16, #tpu.memory_space<vmem>>, vector<1x8x128xbf16>
    %36 = vector.shape_cast %35 : vector<1x8x128xbf16> to vector<8x128xbf16>
    %37 = arith.extf %36 : vector<8x128xbf16> to vector<8x128xf32>
    %38 = arith.addf %37, %34 : vector<8x128xf32>
    %c0_27 = arith.constant 0 : index
    %c0_28 = arith.constant 0 : index
    %39 = vector.load %arg9[%c0_27, %c0_28] : memref<1x128xf32, #tpu.memory_space<vmem>>, vector<1x128xf32>
    %c0_29 = arith.constant 0 : index
    %c0_30 = arith.constant 0 : index
    %40 = vector.load %arg10[%c0_29, %c0_30] : memref<1x128xf32, #tpu.memory_space<vmem>>, vector<1x128xf32>
    %cst_31 = arith.constant dense<0.000000e+00> : vector<8xf32>
    %41 = vector.multi_reduction <add>, %38, %cst_31 [1] : vector<8x128xf32> to vector<8xf32>
    %42 = vector.shape_cast %41 : vector<8xf32> to vector<8x1xf32>
    %cst_32 = arith.constant 1.280000e+02 : f32
    %43 = vector.broadcast %cst_32 : f32 to vector<8x1xf32>
    %44 = arith.divf %42, %43 : vector<8x1xf32>
    %45 = vector.broadcast %44 : vector<8x1xf32> to vector<8x128xf32>
    %46 = arith.subf %38, %45 : vector<8x128xf32>
    %47 = arith.mulf %46, %46 : vector<8x128xf32>
    %cst_33 = arith.constant dense<0.000000e+00> : vector<8xf32>
    %48 = vector.multi_reduction <add>, %47, %cst_33 [1] : vector<8x128xf32> to vector<8xf32>
    %49 = vector.shape_cast %48 : vector<8xf32> to vector<8x1xf32>
    %cst_34 = arith.constant 1.280000e+02 : f32
    %50 = vector.broadcast %cst_34 : f32 to vector<8x1xf32>
    %51 = arith.divf %49, %50 : vector<8x1xf32>
    %52 = vector.broadcast %44 : vector<8x1xf32> to vector<8x128xf32>
    %53 = arith.subf %38, %52 : vector<8x128xf32>
    %cst_35 = arith.constant 9.99999996E-13 : f32
    %54 = vector.broadcast %cst_35 : f32 to vector<8x1xf32>
    %55 = arith.addf %51, %54 : vector<8x1xf32>
    %56 = math.rsqrt %55 : vector<8x1xf32>
    %57 = vector.broadcast %56 : vector<8x1xf32> to vector<8x128xf32>
    %58 = arith.mulf %53, %57 : vector<8x128xf32>
    %59 = vector.broadcast %39 : vector<1x128xf32> to vector<8x128xf32>
    %60 = arith.mulf %58, %59 : vector<8x128xf32>
    %61 = vector.broadcast %40 : vector<1x128xf32> to vector<8x128xf32>
    %62 = arith.addf %60, %61 : vector<8x128xf32>
    %63 = arith.truncf %62 : vector<8x128xf32> to vector<8x128xbf16>
    %c0_36 = arith.constant 0 : index
    %c0_37 = arith.constant 0 : index
    %c0_38 = arith.constant 0 : index
    %64 = vector.load %arg11[%c0_36, %c0_37, %c0_38] : memref<1x8x128xbf16, #tpu.memory_space<vmem>>, vector<1x8x128xbf16>
    %65 = vector.shape_cast %64 : vector<1x8x128xbf16> to vector<8x128xbf16>
    %66 = vector.shape_cast %63 : vector<8x128xbf16> to vector<1x8x128xbf16>
    tpu.vector_store %arg11[%c0_36, %c0_37, %c0_38], %66 {strides = array<i32>} : memref<1x8x128xbf16, #tpu.memory_space<vmem>>, vector<1x8x128xbf16>,
    return
  }
  func.func @transform_0(%arg0: i32, %arg1: i32) -> (i32, i32, i32) {
    %c0_i32 = arith.constant 0 : i32
    %c0_i32_0 = arith.constant 0 : i32
    return %arg0, %arg1, %c0_i32 : i32, i32, i32
  }
  func.func @transform_1(%arg0: i32, %arg1: i32) -> (i32, i32, i32, i32) {
    %c0_i32 = arith.constant 0 : i32
    %c0_i32_0 = arith.constant 0 : i32
    %c0_i32_1 = arith.constant 0 : i32
    return %arg0, %c0_i32, %arg1, %c0_i32_0 : i32, i32, i32, i32
  }
  func.func @transform_2(%arg0: i32, %arg1: i32) -> (i32, i32, i32, i32) {
    %c0_i32 = arith.constant 0 : i32
    %c0_i32_0 = arith.constant 0 : i32
    %c0_i32_1 = arith.constant 0 : i32
    %c0_i32_2 = arith.constant 0 : i32
    return %arg0, %c0_i32, %c0_i32_0, %c0_i32_1 : i32, i32, i32, i32
  }
  func.func @transform_3(%arg0: i32, %arg1: i32) -> (i32, i32, i32, i32) {
    %c0_i32 = arith.constant 0 : i32
    %c0_i32_0 = arith.constant 0 : i32
    %c0_i32_1 = arith.constant 0 : i32
    %c0_i32_2 = arith.constant 0 : i32
    return %arg0, %c0_i32, %c0_i32_0, %c0_i32_1 : i32, i32, i32, i32
  }
  func.func @transform_4(%arg0: i32, %arg1: i32) -> (i32, i32, i32) {
    %c0_i32 = arith.constant 0 : i32
    %c0_i32_0 = arith.constant 0 : i32
    %c0_i32_1 = arith.constant 0 : i32
    return %arg0, %c0_i32, %c0_i32_0 : i32, i32, i32
  }
  func.func @transform_5(%arg0: i32, %arg1: i32) -> (i32, i32) {
    %c0_i32 = arith.constant 0 : i32
    %c0_i32_0 = arith.constant 0 : i32
    %c0_i32_1 = arith.constant 0 : i32
    return %c0_i32, %c0_i32_0 : i32, i32
  }
  func.func @transform_6(%arg0: i32, %arg1: i32) -> (i32, i32) {
    %c0_i32 = arith.constant 0 : i32
    %c0_i32_0 = arith.constant 0 : i32
    %c0_i32_1 = arith.constant 0 : i32
    return %c0_i32, %c0_i32_0 : i32, i32
  }
  func.func @transform_7(%arg0: i32, %arg1: i32) -> (i32, i32) {
    %c0_i32 = arith.constant 0 : i32
    %c0_i32_0 = arith.constant 0 : i32
    %c0_i32_1 = arith.constant 0 : i32
    return %c0_i32, %c0_i32_0 : i32, i32
  }
  func.func @transform_8(%arg0: i32, %arg1: i32) -> (i32, i32) {
    %c0_i32 = arith.constant 0 : i32
    %c0_i32_0 = arith.constant 0 : i32
    %c0_i32_1 = arith.constant 0 : i32
    return %c0_i32, %c0_i32_0 : i32, i32
  }
  func.func @transform_9(%arg0: i32, %arg1: i32) -> (i32, i32, i32) {
    %c0_i32 = arith.constant 0 : i32
    %c0_i32_0 = arith.constant 0 : i32
    return %arg0, %arg1, %c0_i32 : i32, i32, i32
  }
}

</mosaic_0001>

<bundles_post_ra>
// kernel: proposal_categorizer_forward.7
= control target key start
LH: loop header
LB: loop body
LE: loop exit
PB: predicated region body
PF: predicated region fallthrough
CT: control target
= control target key end

     0   :  { %s551_s1 = inlined_call_operand.vmem [shape: bf16[128,384], index: 1, kind: input, shape index: {}]   ;;  %s552_s0 = inlined_call_operand.vmem [shape: bf16[16,128], index: 0, kind: input, shape index: {}]   ;;  %s553_s2 = inlined_call_operand.vmem [shape: f32[1,384], index: 2, kind: input, shape index: {}]   ;;  %s554_s3 = inlined_call_operand.vmem [shape: bf16[16,384], index: 3, kind: output, shape index: {}]  }
   0x1   :  { %v334_v0 = vld [vmem:[%s551_s1 + $0xa8] sm:$0xf]  ;;  %v367_v1 = vld [vmem:[%s551_s1 + $0xb0] sm:$0xf0]  ;;  %v366_v2 = vld [vmem:[%s551_s1 + $0xac] sm:$0xf] }
   0x2   :  { %v335_v3 = vor.u32 %v367_v1, %v334_v0  ;;  %v336_v4 = vld [vmem:[%s551_s1 + $0xb4] sm:$0xf0]  ;;  %v342_v5 = vld [vmem:[%s551_s1 + $0xb0] sm:$0xf]  ;;  %v368_v6 = vld [vmem:[%s551_s1 + $0xb8] sm:$0xf0] }
   0x3   :  { %v339_v7 = vor.u32 %v366_v2, %v336_v4  ;;  %v343_v8 = vor.u32 %v368_v6, %v342_v5  ;;  %v322_v9 = vld [vmem:[%s551_s1 + $0x90] sm:$0xf]  ;;  %v364_v10 = vld [vmem:[%s551_s1 + $0x98] sm:$0xf0]  ;;  %v363_v11 = vld [vmem:[%s551_s1 + $0x94] sm:$0xf] }
   0x4   :  { %190 = vmatpush.bf16.msra.mxu0 %v335_v3  ;;  %v323_v12 = vor.u32 %v364_v10, %v322_v9  ;;  %v324_v13 = vld [vmem:[%s551_s1 + $0x9c] sm:$0xf0]  ;;  %v330_v14 = vld [vmem:[%s551_s1 + $0x98] sm:$0xf]  ;;  %v365_v15 = vld [vmem:[%s551_s1 + $0xa0] sm:$0xf0] }
   0x5   :  { %204 = vmatpush.bf16.msra.mxu1 %v339_v7  ;;  %218 = vmatpush.bf16.msra.mxu2 %v343_v8  ;;  %v327_v16 = vor.u32 %v363_v11, %v324_v13  ;;  %v331_v17 = vor.u32 %v365_v15, %v330_v14  ;;  %v310_v18 = vld [vmem:[%s551_s1 + $0x78] sm:$0xf]  ;;  %v361_v19 = vld [vmem:[%s551_s1 + $0x80] sm:$0xf0]  ;;  %v360_v20 = vld [vmem:[%s551_s1 + $0x7c] sm:$0xf] }
   0x6   :  { %v312_v21 = vld [vmem:[%s551_s1 + $0x84] sm:$0xf0]  ;;  %v318_v22 = vld [vmem:[%s551_s1 + $0x80] sm:$0xf]  ;;  %v362_v23 = vld [vmem:[%s551_s1 + $0x88] sm:$0xf0]  ;;  %v311_v24 = vor.u32 %v361_v19, %v310_v18 }
   0x7   :  { %v315_v25 = vor.u32 %v360_v20, %v312_v21  ;;  %v319_v26 = vor.u32 %v362_v23, %v318_v22  ;;  %v298_v27 = vld [vmem:[%s551_s1 + $0x60] sm:$0xf]  ;;  %v358_v28 = vld [vmem:[%s551_s1 + $0x68] sm:$0xf0]  ;;  %v357_v29 = vld [vmem:[%s551_s1 + $0x64] sm:$0xf] }
   0x8   :  { %191 = vmatpush.bf16.msra.mxu0 %v323_v12  ;;  %v300_v30 = vld [vmem:[%s551_s1 + $0x6c] sm:$0xf0]  ;;  %v306_v31 = vld [vmem:[%s551_s1 + $0x68] sm:$0xf]  ;;  %v359_v32 = vld [vmem:[%s551_s1 + $0x70] sm:$0xf0]  ;;  %v299_v33 = vor.u32 %v358_v28, %v298_v27 }
   0x9   :  { %205 = vmatpush.bf16.msra.mxu1 %v327_v16  ;;  %219 = vmatpush.bf16.msra.mxu2 %v331_v17  ;;  %v303_v34 = vor.u32 %v357_v29, %v300_v30  ;;  %v307_v35 = vor.u32 %v359_v32, %v306_v31  ;;  %v286_v36 = vld [vmem:[%s551_s1 + $0x48] sm:$0xf]  ;;  %v355_v37 = vld [vmem:[%s551_s1 + $0x50] sm:$0xf0]  ;;  %v354_v38 = vld [vmem:[%s551_s1 + $0x4c] sm:$0xf] }
   0xa   :  { %v288_v39 = vld [vmem:[%s551_s1 + $0x54] sm:$0xf0]  ;;  %v294_v40 = vld [vmem:[%s551_s1 + $0x50] sm:$0xf]  ;;  %v356_v41 = vld [vmem:[%s551_s1 + $0x58] sm:$0xf0]  ;;  %v287_v42 = vor.u32 %v355_v37, %v286_v36 }
   0xb   :  { %v291_v43 = vor.u32 %v354_v38, %v288_v39  ;;  %v295_v44 = vor.u32 %v356_v41, %v294_v40  ;;  %v274_v45 = vld [vmem:[%s551_s1 + $0x30] sm:$0xf]  ;;  %v352_v46 = vld [vmem:[%s551_s1 + $0x38] sm:$0xf0]  ;;  %v351_v47 = vld [vmem:[%s551_s1 + $0x34] sm:$0xf] }
   0xc   :  { %192 = vmatpush.bf16.msra.mxu0 %v311_v24  ;;  %v276_v48 = vld [vmem:[%s551_s1 + $0x3c] sm:$0xf0]  ;;  %v282_v49 = vld [vmem:[%s551_s1 + $0x38] sm:$0xf]  ;;  %v353_v50 = vld [vmem:[%s551_s1 + $0x40] sm:$0xf0]  ;;  %v275_v51 = vor.u32 %v352_v46, %v274_v45 }
   0xd   :  { %206 = vmatpush.bf16.msra.mxu1 %v315_v25  ;;  %220 = vmatpush.bf16.msra.mxu2 %v319_v26  ;;  %v279_v52 = vor.u32 %v351_v47, %v276_v48  ;;  %v283_v53 = vor.u32 %v353_v50, %v282_v49  ;;  %v262_v54 = vld [vmem:[%s551_s1 + $0x18] sm:$0xf]  ;;  %v349_v55 = vld [vmem:[%s551_s1 + $0x20] sm:$0xf0]  ;;  %v348_v56 = vld [vmem:[%s551_s1 + $0x1c] sm:$0xf] }
   0xe   :  { %v264_v57 = vld [vmem:[%s551_s1 + $0x24] sm:$0xf0]  ;;  %v270_v58 = vld [vmem:[%s551_s1 + $0x20] sm:$0xf]  ;;  %v350_v59 = vld [vmem:[%s551_s1 + $0x28] sm:$0xf0]  ;;  %v263_v60 = vor.u32 %v349_v55, %v262_v54 }
   0xf   :  { %v267_v61 = vor.u32 %v348_v56, %v264_v57  ;;  %v271_v62 = vor.u32 %v350_v59, %v270_v58  ;;  %v250_v63 = vld [vmem:[%s551_s1] sm:$0xf]  ;;  %v346_v0 = vld [vmem:[%s551_s1 + $0x8] sm:$0xf0]  ;;  %v345_v1 = vld [vmem:[%s551_s1 + $0x4] sm:$0xf] }
  0x10   :  { %193 = vmatpush.bf16.msra.mxu0 %v299_v33  ;;  %v252_v2 = vld [vmem:[%s551_s1 + $0xc] sm:$0xf0]  ;;  %v258_v3 = vld [vmem:[%s551_s1 + $0x8] sm:$0xf]  ;;  %v347_v4 = vld [vmem:[%s551_s1 + $0x10] sm:$0xf0]  ;;  %v251_v5 = vor.u32 %v346_v0, %v250_v63 }
  0x11   :  { %207 = vmatpush.bf16.msra.mxu1 %v303_v34  ;;  %221 = vmatpush.bf16.msra.mxu2 %v307_v35  ;;  %v255_v6 = vor.u32 %v345_v1, %v252_v2  ;;  %v259_v7 = vor.u32 %v347_v4, %v258_v3  ;;  %v344_v8 = vld [vmem:[%s552_s0] sm:$0xff] }
  0x12   :  { %v48_v9 = vld [vmem:[%s553_s2] sm:$0x7] }
  0x13   :  { %v50_v10 = vperm.slane %v48_v9, 0  ;;  %v51_v11 = vperm.slane %v48_v9, 1  ;;  %v52_v17 = vperm.slane %v48_v9, 2 }
  0x14   :  { %194 = vmatpush.bf16.msra.mxu0 %v287_v42 }
  0x15   :  { %208 = vmatpush.bf16.msra.mxu1 %v291_v43  ;;  %222 = vmatpush.bf16.msra.mxu2 %v295_v44 }
  0x18   :  { %195 = vmatpush.bf16.msra.mxu0 %v275_v51 }
  0x19   :  { %209 = vmatpush.bf16.msra.mxu1 %v279_v52  ;;  %223 = vmatpush.bf16.msra.mxu2 %v283_v53 }
  0x1c   :  { %196 = vmatpush.bf16.msra.mxu0 %v263_v60 }
  0x1d   :  { %210 = vmatpush.bf16.msra.mxu1 %v267_v61  ;;  %224 = vmatpush.bf16.msra.mxu2 %v271_v62 }
  0x20   :  { %197 = vmatpush.bf16.msra.mxu0 %v251_v5 }
  0x21   :  { %211 = vmatpush.bf16.msra.mxu1 %v255_v6  ;;  %225 = vmatpush.bf16.msra.mxu2 %v259_v7 }
  0x23   :  { %198 = vmatmul.bf16.vlgmr.msra.gmra.mxu0 %v344_v8 }
  0x24   :  { %212 = vmatmul.bf16.vlgmr.msra.gmra.mxu1 %v344_v8  ;;  %226 = vmatmul.bf16.vlgmr.msra.gmra.mxu2 %v344_v8 }
  0xa0   :  { %v199_v12 = vpop.f32.mrf.mxu0 }
  0xa1   :  { %v200_v13 = vadd.f32 %v199_v12, %v50_v10  ;;  %v213_v14 = vpop.f32.mrf.mxu1 }
  0xa2   :  { %v214_v15 = vadd.f32 %v213_v14, %v51_v11 }
  0xa4   :  { %v232_v16 = vpack.c.bf16 %v214_v15, %v200_v13 }
  0xa6   :  { %236 = vst [vmem:[%s554_s3] sm:$0xff] %v232_v16 }
  0xa7   :  { %v227_v18 = vpop.f32.mrf.mxu2 }
  0xa8   :  { %v228_v19 = vadd.f32 %v227_v18, %v52_v17  ;;  %v201_v20 = vpop.f32.mrf.mxu0 }
  0xa9   :  { %v202_v21 = vadd.f32 %v201_v20, %v50_v10  ;;  %v215_v22 = vpop.f32.mrf.mxu1 }
  0xaa   :  { %v233_v23 = vpack.c.bf16 %v228_v19, %v228_v19  ;;  %v216_v24 = vadd.f32 %v215_v22, %v51_v11 }
  0xac   :  { %237 = vst [vmem:[%s554_s3 + $0x8] sm:$0xf] %v233_v23  ;;  %v234_v25 = vpack.c.bf16 %v216_v24, %v202_v21 }
  0xae   :  { %238 = vst [vmem:[%s554_s3 + $0xc] sm:$0xff] %v234_v25 }
  0xaf   :  { %v229_v26 = vpop.f32.mrf.mxu2 }
  0xb0   :  { %v230_v27 = vadd.f32 %v229_v26, %v52_v17 }
  0xb2   :  { %v235_v28 = vpack.c.bf16 %v230_v27, %v230_v27 }
  0xb4   :  { %239 = vst [vmem:[%s554_s3 + $0x14] sm:$0xf] %v235_v28 }

// kernel: proposal_categorizer_forward.10
= control target key start
LH: loop header
LB: loop body
LE: loop exit
PB: predicated region body
PF: predicated region fallthrough
CT: control target
= control target key end

     0   :  { %8 = vsyncpa [#allocation3], 0  ;;  %s415_s15 = smov [#allocation2]   ;;  %s416_s17 = smov 192   ;;  %s459_s0 = inlined_call_operand.vmem [shape: bf16[16,128], index: 0, kind: input, shape index: {}]   ;;  %s460_s1 = inlined_call_operand.hbm [shape: bf16[128,384], index: 1, kind: input, shape index: {}]   ;;  %s461_s2 = inlined_call_operand.vmem [shape: f32[1,384], index: 2, kind: input, shape index: {}]   ;;  %s462_s3 = inlined_call_operand.vmem [shape: bf16[16,384], index: 3, kind: output, shape index: {}]  }
   0x1   :  { %s15_s14 = sshll.u32 %s460_s1, 4  ;;  %s17_s16 = sshll.u32 %s415_s15, 4  ;;  %s16_s14 = int_to_ptr.hbm [resolvable:$true] %s15_s14  ;;  %s18_s16 = int_to_ptr.vmem [resolvable:$true] %s17_s16 }
   0x2   :  { %s417_s18 = smov 12  }
   0x3   :  { %23 = dma.hbm_to_vmem [thread:$0]  %s16_s14, 3072, %s18_s16, [#allocation3], %s416_s17, %s416_s17, %s417_s18  }
   0x4   :  { %413 = dma.done.wait [#allocation3], 3072  }
   0x5   :  { %414 = vsyncadd [#allocation3], 4294964224  ;;  %v351_v0 = vld [vmem:[#allocation2 + $0xa8] sm:$0xf]  ;;  %v384_v1 = vld [vmem:[#allocation2 + $0xb0] sm:$0xf0] }
   0x6   :  { %v383_v2 = vld [vmem:[#allocation2 + $0xac] sm:$0xf]  ;;  %v352_v3 = vor.u32 %v384_v1, %v351_v0  ;;  %v353_v4 = vld [vmem:[#allocation2 + $0xb4] sm:$0xf0]  ;;  %v359_v5 = vld [vmem:[#allocation2 + $0xb0] sm:$0xf] }
   0x7   :  { %v385_v6 = vld [vmem:[#allocation2 + $0xb8] sm:$0xf0]  ;;  %v356_v7 = vor.u32 %v383_v2, %v353_v4  ;;  %v339_v9 = vld [vmem:[#allocation2 + $0x90] sm:$0xf]  ;;  %v380_v11 = vld [vmem:[#allocation2 + $0x94] sm:$0xf] }
   0x8   :  { %v360_v8 = vor.u32 %v385_v6, %v359_v5  ;;  %v381_v10 = vld [vmem:[#allocation2 + $0x98] sm:$0xf0]  ;;  %206 = vmatpush.bf16.msra.mxu0 %v352_v3  ;;  %v341_v13 = vld [vmem:[#allocation2 + $0x9c] sm:$0xf0]  ;;  %v347_v14 = vld [vmem:[#allocation2 + $0x98] sm:$0xf] }
   0x9   :  { %v340_v12 = vor.u32 %v381_v10, %v339_v9  ;;  %v382_v15 = vld [vmem:[#allocation2 + $0xa0] sm:$0xf0]  ;;  %220 = vmatpush.bf16.msra.mxu1 %v356_v7  ;;  %v344_v16 = vor.u32 %v380_v11, %v341_v13  ;;  %v327_v18 = vld [vmem:[#allocation2 + $0x78] sm:$0xf]  ;;  %v377_v20 = vld [vmem:[#allocation2 + $0x7c] sm:$0xf] }
   0xa   :  { %234 = vmatpush.bf16.msra.mxu2 %v360_v8  ;;  %v348_v17 = vor.u32 %v382_v15, %v347_v14  ;;  %v378_v19 = vld [vmem:[#allocation2 + $0x80] sm:$0xf0]  ;;  %v329_v21 = vld [vmem:[#allocation2 + $0x84] sm:$0xf0]  ;;  %v335_v22 = vld [vmem:[#allocation2 + $0x80] sm:$0xf] }
   0xb   :  { %v379_v23 = vld [vmem:[#allocation2 + $0x88] sm:$0xf0]  ;;  %v328_v24 = vor.u32 %v378_v19, %v327_v18  ;;  %v332_v25 = vor.u32 %v377_v20, %v329_v21  ;;  %v315_v27 = vld [vmem:[#allocation2 + $0x60] sm:$0xf]  ;;  %v374_v29 = vld [vmem:[#allocation2 + $0x64] sm:$0xf] }
   0xc   :  { %207 = vmatpush.bf16.msra.mxu0 %v340_v12  ;;  %v336_v26 = vor.u32 %v379_v23, %v335_v22  ;;  %v375_v28 = vld [vmem:[#allocation2 + $0x68] sm:$0xf0]  ;;  %v317_v30 = vld [vmem:[#allocation2 + $0x6c] sm:$0xf0]  ;;  %v323_v31 = vld [vmem:[#allocation2 + $0x68] sm:$0xf] }
   0xd   :  { %221 = vmatpush.bf16.msra.mxu1 %v344_v16  ;;  %v376_v32 = vld [vmem:[#allocation2 + $0x70] sm:$0xf0]  ;;  %v316_v33 = vor.u32 %v375_v28, %v315_v27  ;;  %v320_v34 = vor.u32 %v374_v29, %v317_v30  ;;  %v303_v36 = vld [vmem:[#allocation2 + $0x48] sm:$0xf]  ;;  %v371_v38 = vld [vmem:[#allocation2 + $0x4c] sm:$0xf] }
   0xe   :  { %235 = vmatpush.bf16.msra.mxu2 %v348_v17  ;;  %v324_v35 = vor.u32 %v376_v32, %v323_v31  ;;  %v372_v37 = vld [vmem:[#allocation2 + $0x50] sm:$0xf0]  ;;  %v305_v39 = vld [vmem:[#allocation2 + $0x54] sm:$0xf0]  ;;  %v311_v40 = vld [vmem:[#allocation2 + $0x50] sm:$0xf] }
   0xf   :  { %v373_v41 = vld [vmem:[#allocation2 + $0x58] sm:$0xf0]  ;;  %v304_v42 = vor.u32 %v372_v37, %v303_v36  ;;  %v308_v43 = vor.u32 %v371_v38, %v305_v39  ;;  %v291_v45 = vld [vmem:[#allocation2 + $0x30] sm:$0xf]  ;;  %v368_v47 = vld [vmem:[#allocation2 + $0x34] sm:$0xf] }
  0x10   :  { %208 = vmatpush.bf16.msra.mxu0 %v328_v24  ;;  %v312_v44 = vor.u32 %v373_v41, %v311_v40  ;;  %v369_v46 = vld [vmem:[#allocation2 + $0x38] sm:$0xf0]  ;;  %v293_v48 = vld [vmem:[#allocation2 + $0x3c] sm:$0xf0]  ;;  %v299_v49 = vld [vmem:[#allocation2 + $0x38] sm:$0xf] }
  0x11   :  { %222 = vmatpush.bf16.msra.mxu1 %v332_v25  ;;  %v370_v50 = vld [vmem:[#allocation2 + $0x40] sm:$0xf0]  ;;  %v292_v51 = vor.u32 %v369_v46, %v291_v45  ;;  %v296_v52 = vor.u32 %v368_v47, %v293_v48  ;;  %v279_v54 = vld [vmem:[#allocation2 + $0x18] sm:$0xf]  ;;  %v365_v56 = vld [vmem:[#allocation2 + $0x1c] sm:$0xf] }
  0x12   :  { %236 = vmatpush.bf16.msra.mxu2 %v336_v26  ;;  %v300_v53 = vor.u32 %v370_v50, %v299_v49  ;;  %v366_v55 = vld [vmem:[#allocation2 + $0x20] sm:$0xf0]  ;;  %v281_v57 = vld [vmem:[#allocation2 + $0x24] sm:$0xf0]  ;;  %v287_v58 = vld [vmem:[#allocation2 + $0x20] sm:$0xf] }
  0x13   :  { %v367_v59 = vld [vmem:[#allocation2 + $0x28] sm:$0xf0]  ;;  %v280_v60 = vor.u32 %v366_v55, %v279_v54  ;;  %v284_v61 = vor.u32 %v365_v56, %v281_v57  ;;  %v267_v63 = vld [vmem:[#allocation2] sm:$0xf]  ;;  %v362_v1 = vld [vmem:[#allocation2 + $0x4] sm:$0xf] }
  0x14   :  { %209 = vmatpush.bf16.msra.mxu0 %v316_v33  ;;  %v288_v62 = vor.u32 %v367_v59, %v287_v58  ;;  %v363_v0 = vld [vmem:[#allocation2 + $0x8] sm:$0xf0]  ;;  %v269_v2 = vld [vmem:[#allocation2 + $0xc] sm:$0xf0]  ;;  %v275_v3 = vld [vmem:[#allocation2 + $0x8] sm:$0xf] }
  0x15   :  { %223 = vmatpush.bf16.msra.mxu1 %v320_v34  ;;  %v364_v4 = vld [vmem:[#allocation2 + $0x10] sm:$0xf0]  ;;  %v268_v5 = vor.u32 %v363_v0, %v267_v63  ;;  %v272_v6 = vor.u32 %v362_v1, %v269_v2  ;;  %v361_v8 = vld [vmem:[%s459_s0] sm:$0xff] }
  0x16   :  { %237 = vmatpush.bf16.msra.mxu2 %v324_v35  ;;  %v276_v7 = vor.u32 %v364_v4, %v275_v3  ;;  %v64_v9 = vld [vmem:[%s461_s2] sm:$0x7] }
  0x17   :  { %v66_v10 = vperm.slane %v64_v9, 0  ;;  %v67_v11 = vperm.slane %v64_v9, 1  ;;  %v68_v17 = vperm.slane %v64_v9, 2 }
  0x18   :  { %210 = vmatpush.bf16.msra.mxu0 %v304_v42 }
  0x19   :  { %224 = vmatpush.bf16.msra.mxu1 %v308_v43 }
  0x1a   :  { %238 = vmatpush.bf16.msra.mxu2 %v312_v44 }
  0x1c   :  { %211 = vmatpush.bf16.msra.mxu0 %v292_v51 }
  0x1d   :  { %225 = vmatpush.bf16.msra.mxu1 %v296_v52 }
  0x1e   :  { %239 = vmatpush.bf16.msra.mxu2 %v300_v53 }
  0x20   :  { %212 = vmatpush.bf16.msra.mxu0 %v280_v60 }
  0x21   :  { %226 = vmatpush.bf16.msra.mxu1 %v284_v61 }
  0x22   :  { %240 = vmatpush.bf16.msra.mxu2 %v288_v62 }
  0x24   :  { %213 = vmatpush.bf16.msra.mxu0 %v268_v5 }
  0x25   :  { %227 = vmatpush.bf16.msra.mxu1 %v272_v6 }
  0x26   :  { %241 = vmatpush.bf16.msra.mxu2 %v276_v7 }
  0x27   :  { %214 = vmatmul.bf16.vlgmr.msra.gmra.mxu0 %v361_v8 }
  0x28   :  { %228 = vmatmul.bf16.vlgmr.msra.gmra.mxu1 %v361_v8 }
  0x29   :  { %242 = vmatmul.bf16.vlgmr.msra.gmra.mxu2 %v361_v8 }
  0xa4   :  { %v215_v12 = vpop.f32.mrf.mxu0 }
  0xa5   :  { %v216_v13 = vadd.f32 %v215_v12, %v66_v10  ;;  %v229_v14 = vpop.f32.mrf.mxu1 }
  0xa6   :  { %v230_v15 = vadd.f32 %v229_v14, %v67_v11 }
  0xa8   :  { %v248_v16 = vpack.c.bf16 %v230_v15, %v216_v13 }
  0xaa   :  { %252 = vst [vmem:[%s462_s3] sm:$0xff] %v248_v16 }
  0xac   :  { %v243_v18 = vpop.f32.mrf.mxu2  ;;  %v217_v20 = vpop.f32.mrf.mxu0 }
  0xad   :  { %v244_v19 = vadd.f32 %v243_v18, %v68_v17  ;;  %v218_v21 = vadd.f32 %v217_v20, %v66_v10  ;;  %v231_v22 = vpop.f32.mrf.mxu1 }
  0xae   :  { %v232_v24 = vadd.f32 %v231_v22, %v67_v11 }
  0xaf   :  { %v249_v23 = vpack.c.bf16 %v244_v19, %v244_v19 }
  0xb0   :  { %v250_v25 = vpack.c.bf16 %v232_v24, %v218_v21 }
  0xb1   :  { %253 = vst [vmem:[%s462_s3 + $0x8] sm:$0xf] %v249_v23 }
  0xb2   :  { %254 = vst [vmem:[%s462_s3 + $0xc] sm:$0xff] %v250_v25 }
  0xb4   :  { %v245_v26 = vpop.f32.mrf.mxu2 }
  0xb5   :  { %v246_v27 = vadd.f32 %v245_v26, %v68_v17 }
  0xb7   :  { %v251_v28 = vpack.c.bf16 %v246_v27, %v246_v27 }
  0xb9   :  { %255 = vst [vmem:[%s462_s3 + $0x14] sm:$0xf] %v251_v28 }
  0xba   :  { %260 = vsyncpa [#allocation3], 1 }

// kernel: proposal_categorizer_forward.8
= control target key start
LH: loop header
LB: loop body
LE: loop exit
PB: predicated region body
PF: predicated region fallthrough
CT: control target
= control target key end

     0   :  { %s1092_s30 = smov 0   ;;  %s1094_s10 = smov 0   ;;  %s1207_s0 = inlined_call_operand.vmem [shape: bf16[2,8,128], index: 0, kind: input, shape index: {}]   ;;  %s1208_s1 = inlined_call_operand.vmem [shape: bf16[2,2,8,64], index: 1, kind: input, shape index: {}]   ;;  %s1209_s2 = inlined_call_operand.vmem [shape: bf16[2,2,8,64], index: 2, kind: input, shape index: {}]   ;;  %s1210_s3 = inlined_call_operand.vmem [shape: bf16[2,2,8,64], index: 3, kind: input, shape index: {}]   ;;  %s1211_s4 = inlined_call_operand.vmem [shape: f32[2,1,8], index: 4, kind: input, shape index: {}]   ;;  %s1212_s5 = inlined_call_operand.vmem [shape: bf16[128,128], index: 5, kind: input, shape index: {}]   ;;  %s1213_s6 = inlined_call_operand.vmem [shape: f32[1,128], index: 6, kind: input, shape index: {}]   ;;  %s1214_s7 = inlined_call_operand.vmem [shape: f32[1,128], index: 7, kind: input, shape index: {}]   ;;  %s1215_s8 = inlined_call_operand.vmem [shape: f32[1,128], index: 8, kind: input, shape index: {}]   ;;  %s1216_s9 = inlined_call_operand.vmem [shape: bf16[2,8,128], index: 9, kind: output, shape index: {}]  }
   0x1   :  { %s1096_s11 = smov 0  }
   0x2 LB: > { %s31_s12 = sadd.s32 1, %s1032_s10  ;;  %p913_p0 = scmp.ge.s32.totalorder %s1036_s11, 1  ;;  %s1036_s11 = sphi %s1096_s11, %s19_s11   ;;  %s1032_s10 = sphi %s1094_s10, %s1218_s10   ;;  %s1028_s30 = sphi %s1092_s30, %s1217_s30  }
   0x3   : > { %p33_p1 = scmp.ge.s32.totalorder %s31_s12, 2  ;;  %p348_p2 = scmp.lt.s32.totalorder %s1036_s11, 3 }
   0x5   : > { %s1220_s12 = smov (%p33_p1, %s31_s12), 0  ;;  %p349_p3 = pnand %p913_p0, %p348_p2 }
   0x6   : > { %p409_p4 = scmp.lt.s32.totalorder (!%p349_p3), %s1028_s30, 1 }
   0x7   : > { %352 = sbr.rel (%p349_p3) target bundleno = 967 (0x3c7), region = 56 }
   0xc   : > { %s1222_s30 = smov (!%p409_p4, %s1028_s30), 1  ;;  %vm457_vm0 = vcmask 523264   ;;  %vm496_vm1 = vcmask 64512   ;;  %vm526_vm2 = vcmask 1043456   ;;  %v1038_v46 = vmov 1983009808  }
   0xd   : > { %s1113_s13 = sshll.u32 %s1222_s30, 3  ;;  %s436_s22 = scalar_lea.vmem %s1211_s4, %s1222_s30  ;;  %v576_v47 = vunpack.c.l.s4 %v1038_v46  ;;  %v1039_v52 = vmov 1934713408   ;;  %v970_v59 = vld [vmem:[%s1212_s5 + $0x38] sm:$0xff]  ;;  %v969_v63 = vld [vmem:[%s1212_s5 + $0x30] sm:$0xff]  ;;  %vm580_vm3 = vcmask 1047556  }
   0xe   : > { %s428_s16 = scalar_lea.vmem %s1209_s2, %s1113_s13  ;;  %s423_s19 = scalar_lea.vmem %s1208_s1, %s1113_s13  ;;  %v451_v6 = vld [vmem:[%s436_s22] sm:$0x1]  ;;  %v583_v53 = vunpack.c.l.s4 %v1039_v52  ;;  %729 = vmatpush.bf16.msra.mxu2 %v970_v59 }
   0xf   : > { %v447_v0 = vld [vmem:[%s428_s16] sm:$0xf]  ;;  %v448_v1 = vld [vmem:[%s428_s16 + $0x4] sm:$0xf]  ;;  %v452_v7 = vsub.f32 1.0, %v451_v6  ;;  %s433_s25 = scalar_lea.vmem %s1210_s3, %s1113_s13  ;;  %v577_v55 = vunpack.c.0.s8 %v576_v47  ;;  %v968_v6 = vld [vmem:[%s1212_s5 + $0x28] sm:$0xff] }
  0x10   : > { %v462_v2 = vsel %vm457_vm0, %v447_v0, 0  ;;  %v481_v3 = vsel %vm457_vm0, %v448_v1, 0  ;;  %v445_v4 = vld [vmem:[%s423_s19] sm:$0xf]  ;;  %v446_v5 = vld [vmem:[%s423_s19 + $0x4] sm:$0xf]  ;;  %v584_v60 = vunpack.c.0.s8 %v583_v53 }
  0x11   : > { %471 = vmatpush.bf16.xpose.msra.mxu0 %v462_v2  ;;  %490 = vmatpush.bf16.xpose.msra.mxu1 %v481_v3  ;;  %v453_v8 = vmul.f32 -1e+09, %v452_v7  ;;  %v449_v18 = vld [vmem:[%s433_s25] sm:$0xf]  ;;  %v450_v20 = vld [vmem:[%s433_s25 + $0x4] sm:$0xf] }
  0x12   : > { %v528_v19 = vsel %vm526_vm2, %v449_v18, 0  ;;  %v547_v21 = vsel %vm526_vm2, %v450_v20, 0  ;;  %730 = vmatpush.bf16.msra.mxu2 %v969_v63  ;;  %s1040_s25 = smov 64   ;;  %s914_s26 = sshll.u32 %s1222_s30, 2 }
  0x13   : > { %v455_v9 = vperm.slane %v453_v8, 0  ;;  %537 = vmatpush.bf16.msra.mxu3 %v528_v19  ;;  %s415_s29 = scalar_lea.vmem %s1207_s0, %s914_s26  ;;  %s443_s21 = scalar_lea.vmem %s1216_s9, %s914_s26 }
  0x16   : > { %731 = vmatpush.bf16.msra.mxu2 %v968_v6 }
  0x17   : > { %556 = vmatpush.bf16.msrb.mxu3 %v547_v21 }
  0x18   : > { %922 = vmatmul.msk.bf16.vlgmr.msra.gmra.mxu0 %vm457_vm0, %v445_v4  ;;  %923 = vmatmul.msk.bf16.vlgmr.msra.gmra.mxu1 %vm457_vm0, %v446_v5 }
  0x95   : > { %v473_v10 = vpop.f32.mrf.mxu0  ;;  %v492_v11 = vpop.f32.mrf.mxu1 }
  0x96   : > { %v474_v12 = vadd.f32 %v473_v10, %v455_v9  ;;  %v493_v14 = vadd.f32 %v492_v11, %v455_v9 }
  0x98   : > { %v497_v13 = vsel %vm496_vm1, %v474_v12, -inf  ;;  %v500_v17 = vsel %vm496_vm1, %v493_v14, -inf }
  0x99   : > { %498 = vmax.xlane.f32.xlu0 %v497_v13  ;;  %v967_v13 = vld [vmem:[%s1212_s5 + $0x20] sm:$0xff] }
  0x9a   : > { %732 = vmatpush.bf16.msra.mxu2 %v967_v13  ;;  %v1001_v13 = vld [vmem:[%s1215_s8] ss:$0 sm:$0xff] }
  0x9d   : > { %v475_v15 = vpop.f32.mrf.mxu0  ;;  %v494_v16 = vpop.f32.mrf.mxu1 }
  0xa1   : > { %501 = vmax.xlane.f32.xlu0 %v500_v17 }
 0x10c   : > { %v499_v22 = vpop.xlane.xlu0 %498 }
 0x10d   : > { %v503_v23 = vsub.f32 %v474_v12, %v499_v22 }
 0x10f   : > { %v505_v24 = vpack.c.bf16 %v503_v23, %v503_v23  ;;  %v966_v23 = vld [vmem:[%s1212_s5 + $0x18] sm:$0xff] }
 0x110   : > { %733 = vmatpush.bf16.msra.mxu2 %v966_v23 }
 0x111   : > { %v507_v25 = vunpack.c.l.bf16 %v505_v24 }
 0x113   : > { %v509_v26 = vmul.f32 1.442695, %v507_v25 }
 0x114   : > { %v502_v27 = vpop.xlane.xlu0 %501 }
 0x115   : > { %1002 = vpow2.f32 %v509_v26  ;;  %v504_v28 = vsub.f32 %v493_v14, %v502_v27 }
 0x117   : > { %v506_v29 = vpack.c.bf16 %v504_v28, %v504_v28 }
 0x119   : > { %v508_v30 = vunpack.c.l.bf16 %v506_v29 }
 0x11b   : > { %v1003_v31 = vpop.eup %1002  ;;  %v511_v32 = vmul.f32 1.442695, %v508_v30 }
 0x11c   : > { %v513_v33 = vpack.c.bf16 %v1003_v31, %v1003_v31  ;;  %v965_v31 = vld [vmem:[%s1212_s5 + $0x10] sm:$0xff] }
 0x11d   : > { %1004 = vpow2.f32 %v511_v32  ;;  %734 = vmatpush.bf16.msra.mxu2 %v965_v31 }
 0x11e   : > { %924 = vmatmul.msk.bf16.vlgmr.msra.gmra.mxu3 %vm496_vm1, %v513_v33  ;;  %v515_v34 = vunpack.c.l.bf16 %v513_v33 }
 0x120   : > { %v517_v35 = vsel %vm496_vm1, %v515_v34, 0.0 }
 0x121   : > { %518 = vadd.xlane.f32.xlu1 %v517_v35 }
 0x123   : > { %v1005_v36 = vpop.eup %1004 }
 0x124   : > { %v514_v37 = vpack.c.bf16 %v1005_v36, %v1005_v36 }
 0x126   : > { %v516_v38 = vunpack.c.l.bf16 %v514_v37 }
 0x128   : > { %v520_v39 = vsel %vm496_vm1, %v516_v38, 0.0  ;;  %v964_v38 = vld [vmem:[%s1212_s5 + $0x8] sm:$0xff] }
 0x129   : > { %521 = vadd.xlane.f32.xlu1 %v520_v39  ;;  %735 = vmatpush.bf16.msra.mxu2 %v964_v38 }
 0x12e   : > { %925 = vmatmul.msk.bf16.vlgmr.msrb.gmra.mxu3 %vm496_vm1, %v514_v37 }
 0x194   : > { %v519_v40 = vpop.xlane.xlu1 %518 }
 0x195   : > { %1006 = vrcp.f32 %v519_v40 }
 0x19b   : > { %v1007_v44 = vpop.eup %1006 }
 0x19c   : > { %v522_v42 = vpop.xlane.xlu1 %521 }
 0x19d   : > { %1008 = vrcp.f32 %v522_v42 }
 0x1a1   : > { %v539_v41 = vpop.f32.mrf.mxu3 }
 0x1a2   : > { %v564_v45 = vmul.f32 %v1007_v44, %v539_v41 }
 0x1a3   : > { %v1009_v48 = vpop.eup %1008 }
 0x1a4   : > { %v566_v50 = vpack.c.bf16 %v564_v45, %v564_v45 }
 0x1a6   : > { %v571_v56 = vshrl.u32 %v566_v50, 16 }
 0x1a9   : > { %v541_v43 = vpop.f32.mrf.mxu3 }
 0x1aa   : > { %v963_v43 = vld [vmem:[%s1212_s5] sm:$0xff] }
 0x1ab   : > { %736 = vmatpush.bf16.msra.mxu2 %v963_v43 }
 0x1b1   : > { %v558_v49 = vpop.f32.mrf.mxu3 }
 0x1b2   : > { %v565_v51 = vmul.f32 %v1009_v48, %v558_v49  ;;  %v742_v48 = vld [vmem:[%s415_s29] sm:$0xf] }
 0x1b3   : > { %v999_v49 = vld [vmem:[%s1213_s6] ss:$0 sm:$0xff] }
 0x1b4   : > { %v567_v54 = vpack.c.bf16 %v565_v51, %v565_v51 }
 0x1b6   : > { %v570_v57 = vpack.i.b16 %v567_v54, %v566_v50  ;;  %v572_v58 = vshrl.u32 %v567_v54, 16  ;;  %v743_v50 = vunpack.c.l.bf16 %v742_v48 }
 0x1b8   : > { %v573_v61 = vpack.i.b16 %v572_v58, %v571_v56  ;;  %v578_v62 = vperm.slane %v570_v57, %v577_v55 }
 0x1b9   : > { %v560_v0 = vpop.f32.mrf.mxu3 }
 0x1ba   : > { %v579_v1 = vrot.slane %v578_v62, 4  ;;  %v598_v2 = vperm.slane %v573_v61, %v577_v55  ;;  %v585_v3 = vperm.slane %v578_v62, %v584_v60 }
 0x1bc   : > { %v581_v4 = vsel %vm580_vm3, 0, %v579_v1  ;;  %v599_v5 = vrot.slane %v598_v2, 4  ;;  %v604_v8 = vperm.slane %v598_v2, %v584_v60  ;;  %v590_v10 = vrot.slane %v585_v3, 4 }
 0x1bd   : > { %v589_v7 = vperm.slane %v581_v4, %v584_v60 }
 0x1be   : > { %v600_v9 = vsel %vm580_vm3, 0, %v599_v5  ;;  %v609_v15 = vrot.slane %v604_v8, 4  ;;  %v591_v18 = vsel %vm580_vm3, 0, %v590_v10 }
 0x1bf   : > { %v592_v11 = vrot.slane %v589_v7, 4  ;;  %v608_v12 = vperm.slane %v600_v9, %v584_v60 }
 0x1c0   : > { %v610_v24 = vsel %vm580_vm3, 0, %v609_v15 }
 0x1c1   : > { %v593_v14 = vsel %vm580_vm3, 0, %v592_v11  ;;  %v611_v16 = vrot.slane %v608_v12, 4  ;;  %v613_v20 = vsel %vm580_vm3, %v592_v11, %v585_v3  ;;  %v1000_v11 = vld [vmem:[%s1214_s7] ss:$0 sm:$0xff] }
 0x1c2   : > { %v618_v17 = vrot.slane %v593_v14, 4  ;;  %v617_v28 = vperm.slane %v613_v20, %v577_v55 }
 0x1c3   : > { %v612_v19 = vsel %vm580_vm3, 0, %v611_v16  ;;  %v630_v26 = vsel %vm580_vm3, %v611_v16, %v604_v8 }
 0x1c4   : > { %v619_v21 = vsel %vm580_vm3, %v618_v17, %v591_v18  ;;  %v635_v22 = vrot.slane %v612_v19, 4  ;;  %v634_v33 = vperm.slane %v630_v26, %v577_v55 }
 0x1c5   : > { %v623_v25 = vperm.slane %v619_v21, %v577_v55 }
 0x1c6   : > { %v636_v27 = vsel %vm580_vm3, %v635_v22, %v610_v24 }
 0x1c7   : > { %v624_v29 = vrot.slane %v623_v25, 4  ;;  %v640_v30 = vperm.slane %v636_v27, %v577_v55  ;;  %v1041_v55 = vmov 128.0  }
 0x1c8   : > { %1010 = vrcp.f32 %v1041_v55 }
 0x1c9   : > { %v625_v32 = vsel %vm580_vm3, %v624_v29, %v617_v28  ;;  %v641_v34 = vrot.slane %v640_v30, 4 }
 0x1ca   : > { %v629_v35 = vperm.slane %v625_v32, %v584_v60 }
 0x1cb   : > { %v642_v36 = vsel %vm580_vm3, %v641_v34, %v634_v33 }
 0x1cc   : > { %v646_v37 = vperm.slane %v642_v36, %v584_v60  ;;  %v650_v39 = vshrl.u32 %v629_v35, 16 }
 0x1ce   : > { %v651_v40 = vshrl.u32 %v646_v37, 16  ;;  %v649_v41 = vpack.i.b16 %v646_v37, %v629_v35  ;;  %v1011_v56 = vpop.eup %1010 }
 0x1cf   : > { %v750_v57 = vmul.f32 128.0, %v1011_v56  ;;  %vm754_vm4 = vweird.f32 %v1011_v56 }
 0x1d0   : > { %v652_v42 = vpack.i.b16 %v651_v40, %v650_v39 }
 0x1d1   : > { %v751_v58 = vsub.f32 1.0, %v750_v57 }
 0x1d2   : > { %v653_v44 = vunpack.c.l.b16 %v652_v42 }
 0x1d3   : > { %v752_v59 = vmul.f32 %v1011_v56, %v751_v58 }
 0x1d4   : > { %v654_v45 = vpack.c.b16 %v653_v44, %v653_v44 }
 0x1d5   : > { %v753_v60 = vadd.f32 %v1011_v56, %v752_v59 }
 0x1d6   : > { %655 = vrot.lane.b32.xlu2 %v654_v45, %s1040_s25 }
 0x1d7   : > { %v755_v61 = vsel %vm754_vm4, %v1011_v56, %v753_v60 }
 0x230   : > { %v656_v46 = vpop.permute.xlu2 %655 }
 0x231   : > { %v659_v47 = vsel %vm457_vm0, %v649_v41, %v656_v46 }
 0x232   : > { %737 = vmatmul.bf16.vlgmr.msra.gmra.mxu2 %v659_v47 }
 0x2b5   : > { %v738_v51 = vpop.f32.mrf.mxu2 }
 0x2b6   : > { %v739_v52 = vadd.f32 %v999_v49, %v738_v51 }
 0x2b8   : > { %v744_v53 = vadd.f32 %v743_v50, %v739_v52 }
 0x2ba   : > { %747 = vadd.xlane.f32.xlu2 %v744_v53 }
 0x2bd   : > { %v740_v54 = vpop.f32.mrf.mxu2 }
 0x32d   : > { %v748_v62 = vpop.xlane.xlu2 %747 }
 0x32e   : > { %v756_v63 = vmul.f32 %v755_v61, %v748_v62 }
 0x330   : > { %v757_v0 = vsub.f32 %v744_v53, %v756_v63 }
 0x332   : > { %v758_v1 = vmul.f32 %v757_v0, %v757_v0 }
 0x334   : > { %759 = vadd.xlane.f32.xlu0 %v758_v1 }
 0x3a7   : > { %v760_v2 = vpop.xlane.xlu0 %759 }
 0x3a8   : > { %v761_v3 = vmul.f32 %v760_v2, %v755_v61 }
 0x3aa   : > { %v762_v4 = vadd.f32 1e-12, %v761_v3 }
 0x3ac   : > { %1012 = vrsqrt.f32 %v762_v4  ;;  %vm769_vm6 = vweird.f32 %v762_v4 }
 0x3b2   : > { %v1013_v5 = vpop.eup %1012 }
 0x3b3   : > { %v764_v6 = vmul.f32 %v1013_v5, %v762_v4  ;;  %vm770_vm5 = vweird.f32 %v1013_v5 }
 0x3b4   : > { %vm771_vm7 = vmor %vm769_vm6, %vm770_vm5 }
 0x3b5   : > { %v765_v7 = vmul.f32 %v1013_v5, %v764_v6 }
 0x3b7   : > { %v766_v8 = vmul.f32 0.5, %v765_v7 }
 0x3b9   : > { %v767_v9 = vsub.f32 1.5, %v766_v8 }
 0x3bb   : > { %v768_v10 = vmul.f32 %v1013_v5, %v767_v9 }
 0x3bd   : > { %v772_v12 = vsel %vm771_vm7, %v1013_v5, %v768_v10 }
 0x3be   : > { %v773_v14 = vmul.f32 %v772_v12, %v757_v0 }
 0x3c0   : > { %v777_v15 = vmul.f32 %v1000_v11, %v773_v14 }
 0x3c2   : > { %v781_v16 = vadd.f32 %v1001_v13, %v777_v15 }
 0x3c4   : > { %v782_v17 = vpack.c.bf16 %v781_v16, %v781_v16 }
 0x3c6   : > { %783 = vst [vmem:[%s443_s21] sm:$0xf] %v782_v17 }
 0x3c7 PF: > { %s19_s11 = sadd.s32 1, %s1036_s11   ;;  %s1217_s30 = smov %s1032_s10 }
 0x3c8   : > { %p16_p5 = scmp.ge.s32.totalorder %s19_s11, 4   ;;  %s1218_s10 = smov %s1220_s12 }
 0x3ca   :  { %18 = sbr.rel (!%p16_p5) target bundleno = 2 (0x2), region = 98 }

// kernel: proposal_categorizer_forward.9
= control target key start
LH: loop header
LB: loop body
LE: loop exit
PB: predicated region body
PF: predicated region fallthrough
CT: control target
= control target key end

     0   :  { %12 = vsyncpa [#allocation4], 0  ;;  %s1182_s27 = smov [#allocation3]   ;;  %s1183_s29 = smov 64   ;;  %s1490_s0 = inlined_call_operand.vmem [shape: bf16[16,128], index: 0, kind: input, shape index: {}]   ;;  %s1491_s1 = inlined_call_operand.vmem [shape: bf16[128,512], index: 1, kind: input, shape index: {}]   ;;  %s1492_s2 = inlined_call_operand.vmem [shape: f32[1,512], index: 2, kind: input, shape index: {}]   ;;  %s1493_s3 = inlined_call_operand.hbm [shape: bf16[512,128], index: 3, kind: input, shape index: {}]   ;;  %s1494_s4 = inlined_call_operand.vmem [shape: f32[1,128], index: 4, kind: input, shape index: {}]   ;;  %s1495_s5 = inlined_call_operand.vmem [shape: f32[1,128], index: 5, kind: input, shape index: {}]   ;;  %s1496_s6 = inlined_call_operand.vmem [shape: f32[1,128], index: 6, kind: input, shape index: {}]   ;;  %s1497_s7 = inlined_call_operand.vmem [shape: bf16[16,128], index: 7, kind: output, shape index: {}]  }
   0x1   :  { %s23_s26 = sshll.u32 %s1493_s3, 4  ;;  %s25_s28 = sshll.u32 %s1182_s27, 4  ;;  %s24_s26 = int_to_ptr.hbm [resolvable:$true] %s23_s26  ;;  %s26_s28 = int_to_ptr.vmem [resolvable:$true] %s25_s28 }
   0x2   :  { %s1184_s30 = smov 4  }
   0x3   :  { %31 = dma.hbm_to_vmem [thread:$0]  %s24_s26, 4096, %s26_s28, [#allocation4], %s1183_s29, %s1183_s29, %s1184_s30  }
   0x4   :  { %1180 = dma.done.wait [#allocation4], 4096  }
   0x5   :  { %1181 = vsyncadd [#allocation4], 4294963200  ;;  %v911_v0 = vld [vmem:[%s1491_s1 + $0xe0] sm:$0xf]  ;;  %v1084_v1 = vld [vmem:[%s1491_s1 + $0xec] sm:$0xf0] }
   0x6   :  { %v1082_v2 = vld [vmem:[%s1491_s1 + $0xe4] sm:$0xf]  ;;  %v912_v3 = vor.u32 %v1084_v1, %v911_v0  ;;  %v913_v4 = vld [vmem:[%s1491_s1 + $0xf0] sm:$0xf0]  ;;  %v919_v5 = vld [vmem:[%s1491_s1 + $0xe8] sm:$0xf] }
   0x7   :  { %v1085_v6 = vld [vmem:[%s1491_s1 + $0xf4] sm:$0xf0]  ;;  %v916_v7 = vor.u32 %v1082_v2, %v913_v4  ;;  %v1083_v9 = vld [vmem:[%s1491_s1 + $0xec] sm:$0xf]  ;;  %v921_v10 = vld [vmem:[%s1491_s1 + $0xf8] sm:$0xf0] }
   0x8   :  { %v920_v8 = vor.u32 %v1085_v6, %v919_v5  ;;  %v895_v11 = vld [vmem:[%s1491_s1 + $0xc0] sm:$0xf]  ;;  %258 = vmatpush.bf16.msra.mxu0 %v912_v3  ;;  %v924_v12 = vor.u32 %v1083_v9, %v921_v10  ;;  %v1080_v13 = vld [vmem:[%s1491_s1 + $0xcc] sm:$0xf0]  ;;  %v1078_v14 = vld [vmem:[%s1491_s1 + $0xc4] sm:$0xf] }
   0x9   :  { %v897_v15 = vld [vmem:[%s1491_s1 + $0xd0] sm:$0xf0]  ;;  %272 = vmatpush.bf16.msra.mxu1 %v916_v7  ;;  %v896_v16 = vor.u32 %v1080_v13, %v895_v11  ;;  %v903_v18 = vld [vmem:[%s1491_s1 + $0xc8] sm:$0xf]  ;;  %v1081_v19 = vld [vmem:[%s1491_s1 + $0xd4] sm:$0xf0] }
   0xa   :  { %286 = vmatpush.bf16.msra.mxu2 %v920_v8  ;;  %v900_v17 = vor.u32 %v1078_v14, %v897_v15  ;;  %v1079_v20 = vld [vmem:[%s1491_s1 + $0xcc] sm:$0xf]  ;;  %300 = vmatpush.bf16.msra.mxu3 %v924_v12  ;;  %v904_v21 = vor.u32 %v1081_v19, %v903_v18  ;;  %v905_v22 = vld [vmem:[%s1491_s1 + $0xd8] sm:$0xf0]  ;;  %v879_v23 = vld [vmem:[%s1491_s1 + $0xa0] sm:$0xf] }
   0xb   :  { %v1076_v24 = vld [vmem:[%s1491_s1 + $0xac] sm:$0xf0]  ;;  %v908_v25 = vor.u32 %v1079_v20, %v905_v22  ;;  %v1074_v26 = vld [vmem:[%s1491_s1 + $0xa4] sm:$0xf]  ;;  %v881_v27 = vld [vmem:[%s1491_s1 + $0xb0] sm:$0xf0] }
   0xc   :  { %v887_v28 = vld [vmem:[%s1491_s1 + $0xa8] sm:$0xf]  ;;  %259 = vmatpush.bf16.msra.mxu0 %v896_v16  ;;  %v880_v29 = vor.u32 %v1076_v24, %v879_v23  ;;  %v1077_v30 = vld [vmem:[%s1491_s1 + $0xb4] sm:$0xf0]  ;;  %v1075_v31 = vld [vmem:[%s1491_s1 + $0xac] sm:$0xf]  ;;  %v884_v33 = vor.u32 %v1074_v26, %v881_v27 }
   0xd   :  { %v889_v32 = vld [vmem:[%s1491_s1 + $0xb8] sm:$0xf0]  ;;  %273 = vmatpush.bf16.msra.mxu1 %v900_v17  ;;  %v888_v34 = vor.u32 %v1077_v30, %v887_v28  ;;  %v863_v35 = vld [vmem:[%s1491_s1 + $0x80] sm:$0xf]  ;;  %v1072_v36 = vld [vmem:[%s1491_s1 + $0x8c] sm:$0xf0] }
   0xe   :  { %287 = vmatpush.bf16.msra.mxu2 %v904_v21  ;;  %v1070_v37 = vld [vmem:[%s1491_s1 + $0x84] sm:$0xf]  ;;  %301 = vmatpush.bf16.msra.mxu3 %v908_v25  ;;  %v892_v38 = vor.u32 %v1075_v31, %v889_v32  ;;  %v865_v39 = vld [vmem:[%s1491_s1 + $0x90] sm:$0xf0]  ;;  %v871_v40 = vld [vmem:[%s1491_s1 + $0x88] sm:$0xf]  ;;  %v864_v44 = vor.u32 %v1072_v36, %v863_v35 }
   0xf   :  { %v1073_v41 = vld [vmem:[%s1491_s1 + $0x94] sm:$0xf0]  ;;  %v1071_v42 = vld [vmem:[%s1491_s1 + $0x8c] sm:$0xf]  ;;  %v873_v43 = vld [vmem:[%s1491_s1 + $0x98] sm:$0xf0]  ;;  %v868_v45 = vor.u32 %v1070_v37, %v865_v39 }
  0x10   :  { %260 = vmatpush.bf16.msra.mxu0 %v880_v29  ;;  %v872_v46 = vor.u32 %v1073_v41, %v871_v40  ;;  %v847_v47 = vld [vmem:[%s1491_s1 + $0x60] sm:$0xf]  ;;  %v1068_v48 = vld [vmem:[%s1491_s1 + $0x6c] sm:$0xf0]  ;;  %v1066_v49 = vld [vmem:[%s1491_s1 + $0x64] sm:$0xf]  ;;  %v876_v50 = vor.u32 %v1071_v42, %v873_v43 }
  0x11   :  { %274 = vmatpush.bf16.msra.mxu1 %v884_v33  ;;  %v849_v51 = vld [vmem:[%s1491_s1 + $0x70] sm:$0xf0]  ;;  %v855_v52 = vld [vmem:[%s1491_s1 + $0x68] sm:$0xf]  ;;  %v1069_v53 = vld [vmem:[%s1491_s1 + $0x74] sm:$0xf0]  ;;  %v848_v56 = vor.u32 %v1068_v48, %v847_v47 }
  0x12   :  { %288 = vmatpush.bf16.msra.mxu2 %v888_v34  ;;  %302 = vmatpush.bf16.msra.mxu3 %v892_v38  ;;  %v1067_v54 = vld [vmem:[%s1491_s1 + $0x6c] sm:$0xf]  ;;  %v857_v55 = vld [vmem:[%s1491_s1 + $0x78] sm:$0xf0]  ;;  %v852_v57 = vor.u32 %v1066_v49, %v849_v51  ;;  %v856_v58 = vor.u32 %v1069_v53, %v855_v52  ;;  %v831_v59 = vld [vmem:[%s1491_s1 + $0x40] sm:$0xf] }
  0x13   :  { %v1064_v60 = vld [vmem:[%s1491_s1 + $0x4c] sm:$0xf0]  ;;  %v1062_v61 = vld [vmem:[%s1491_s1 + $0x44] sm:$0xf]  ;;  %v860_v62 = vor.u32 %v1067_v54, %v857_v55  ;;  %v833_v63 = vld [vmem:[%s1491_s1 + $0x50] sm:$0xf0] }
  0x14   :  { %261 = vmatpush.bf16.msra.mxu0 %v864_v44  ;;  %v839_v0 = vld [vmem:[%s1491_s1 + $0x48] sm:$0xf]  ;;  %v1065_v1 = vld [vmem:[%s1491_s1 + $0x54] sm:$0xf0]  ;;  %v1063_v2 = vld [vmem:[%s1491_s1 + $0x4c] sm:$0xf]  ;;  %v832_v4 = vor.u32 %v1064_v60, %v831_v59  ;;  %v836_v6 = vor.u32 %v1062_v61, %v833_v63 }
  0x15   :  { %275 = vmatpush.bf16.msra.mxu1 %v868_v45  ;;  %v841_v3 = vld [vmem:[%s1491_s1 + $0x58] sm:$0xf0]  ;;  %v815_v5 = vld [vmem:[%s1491_s1 + $0x20] sm:$0xf]  ;;  %v840_v7 = vor.u32 %v1065_v1, %v839_v0  ;;  %v1060_v8 = vld [vmem:[%s1491_s1 + $0x2c] sm:$0xf0] }
  0x16   :  { %289 = vmatpush.bf16.msra.mxu2 %v872_v46  ;;  %303 = vmatpush.bf16.msra.mxu3 %v876_v50  ;;  %v1058_v9 = vld [vmem:[%s1491_s1 + $0x24] sm:$0xf]  ;;  %v817_v10 = vld [vmem:[%s1491_s1 + $0x30] sm:$0xf0]  ;;  %v844_v11 = vor.u32 %v1063_v2, %v841_v3  ;;  %v823_v12 = vld [vmem:[%s1491_s1 + $0x28] sm:$0xf]  ;;  %v816_v16 = vor.u32 %v1060_v8, %v815_v5 }
  0x17   :  { %v1061_v13 = vld [vmem:[%s1491_s1 + $0x34] sm:$0xf0]  ;;  %v1059_v14 = vld [vmem:[%s1491_s1 + $0x2c] sm:$0xf]  ;;  %v825_v15 = vld [vmem:[%s1491_s1 + $0x38] sm:$0xf0]  ;;  %v820_v17 = vor.u32 %v1058_v9, %v817_v10 }
  0x18   :  { %262 = vmatpush.bf16.msra.mxu0 %v848_v56  ;;  %v824_v18 = vor.u32 %v1061_v13, %v823_v12  ;;  %v799_v19 = vld [vmem:[%s1491_s1] sm:$0xf]  ;;  %v1056_v20 = vld [vmem:[%s1491_s1 + $0xc] sm:$0xf0]  ;;  %v1054_v21 = vld [vmem:[%s1491_s1 + $0x4] sm:$0xf]  ;;  %v828_v22 = vor.u32 %v1059_v14, %v825_v15 }
  0x19   :  { %276 = vmatpush.bf16.msra.mxu1 %v852_v57  ;;  %v801_v23 = vld [vmem:[%s1491_s1 + $0x10] sm:$0xf0]  ;;  %v807_v24 = vld [vmem:[%s1491_s1 + $0x8] sm:$0xf]  ;;  %v1057_v25 = vld [vmem:[%s1491_s1 + $0x14] sm:$0xf0]  ;;  %v800_v28 = vor.u32 %v1056_v20, %v799_v19 }
  0x1a   :  { %290 = vmatpush.bf16.msra.mxu2 %v856_v58  ;;  %304 = vmatpush.bf16.msra.mxu3 %v860_v62  ;;  %v1055_v26 = vld [vmem:[%s1491_s1 + $0xc] sm:$0xf]  ;;  %v809_v27 = vld [vmem:[%s1491_s1 + $0x18] sm:$0xf0]  ;;  %v804_v29 = vor.u32 %v1054_v21, %v801_v23  ;;  %v808_v30 = vor.u32 %v1057_v25, %v807_v24  ;;  %v1053_v32 = vld [vmem:[%s1490_s0] sm:$0xff] }
  0x1b   :  { %v812_v31 = vor.u32 %v1055_v26, %v809_v27  ;;  %v1093_v33 = vld [vmem:[#allocation3 + $0x38] sm:$0xff]  ;;  %v1092_v35 = vld [vmem:[#allocation3 + $0x30] sm:$0xff]  ;;  %v1091_v39 = vld [vmem:[#allocation3 + $0x28] sm:$0xff] }
  0x1c   :  { %263 = vmatpush.bf16.msra.mxu0 %v832_v4  ;;  %v1101_v34 = vld [vmem:[#allocation3 + $0x78] sm:$0xff]  ;;  %v1100_v36 = vld [vmem:[#allocation3 + $0x70] sm:$0xff]  ;;  %v1099_v40 = vld [vmem:[#allocation3 + $0x68] sm:$0xff] }
  0x1d   :  { %277 = vmatpush.bf16.msra.mxu1 %v836_v6  ;;  %v1109_v37 = vld [vmem:[#allocation3 + $0xb8] sm:$0xff]  ;;  %v1108_v41 = vld [vmem:[#allocation3 + $0xb0] sm:$0xff]  ;;  %v1090_v43 = vld [vmem:[#allocation3 + $0x20] sm:$0xff] }
  0x1e   :  { %291 = vmatpush.bf16.msra.mxu2 %v840_v7  ;;  %305 = vmatpush.bf16.msra.mxu3 %v844_v11  ;;  %v1117_v38 = vld [vmem:[#allocation3 + $0xf8] sm:$0xff]  ;;  %v1116_v42 = vld [vmem:[#allocation3 + $0xf0] sm:$0xff]  ;;  %v1098_v44 = vld [vmem:[#allocation3 + $0x60] sm:$0xff] }
  0x1f   :  { %v1107_v45 = vld [vmem:[#allocation3 + $0xa8] sm:$0xff]  ;;  %v1089_v47 = vld [vmem:[#allocation3 + $0x18] sm:$0xff]  ;;  %v1106_v49 = vld [vmem:[#allocation3 + $0xa0] sm:$0xff] }
  0x20   :  { %264 = vmatpush.bf16.msra.mxu0 %v816_v16  ;;  %v1115_v46 = vld [vmem:[#allocation3 + $0xe8] sm:$0xff]  ;;  %v1097_v48 = vld [vmem:[#allocation3 + $0x58] sm:$0xff]  ;;  %v1114_v50 = vld [vmem:[#allocation3 + $0xe0] sm:$0xff] }
  0x21   :  { %278 = vmatpush.bf16.msra.mxu1 %v820_v17  ;;  %v1088_v51 = vld [vmem:[#allocation3 + $0x10] sm:$0xff]  ;;  %v1427_v53 = vld [vmem:[%s1492_s2] sm:$0xf]  ;;  %v1105_v54 = vld [vmem:[#allocation3 + $0x98] sm:$0xff] }
  0x22   :  { %292 = vmatpush.bf16.msra.mxu2 %v824_v18  ;;  %306 = vmatpush.bf16.msra.mxu3 %v828_v22  ;;  %v1096_v52 = vld [vmem:[#allocation3 + $0x50] sm:$0xff]  ;;  %v1113_v55 = vld [vmem:[#allocation3 + $0xd8] sm:$0xff]  ;;  %v84_v56 = vperm.slane %v1427_v53, 0  ;;  %v1087_v57 = vld [vmem:[#allocation3 + $0x8] sm:$0xff]  ;;  %v85_v60 = vperm.slane %v1427_v53, 1  ;;  %v86_v8 = vperm.slane %v1427_v53, 2 }
  0x23   :  { %v1095_v58 = vld [vmem:[#allocation3 + $0x48] sm:$0xff]  ;;  %v1104_v59 = vld [vmem:[#allocation3 + $0x90] sm:$0xff]  ;;  %v1086_v62 = vld [vmem:[#allocation3] sm:$0xff]  ;;  %v87_v10 = vperm.slane %v1427_v53, 3 }
  0x24   :  { %265 = vmatpush.bf16.msra.mxu0 %v800_v28  ;;  %v1112_v61 = vld [vmem:[#allocation3 + $0xd0] sm:$0xff]  ;;  %v1094_v63 = vld [vmem:[#allocation3 + $0x40] sm:$0xff]  ;;  %v1103_v3 = vld [vmem:[#allocation3 + $0x88] sm:$0xff] }
  0x25   :  { %279 = vmatpush.bf16.msra.mxu1 %v804_v29  ;;  %v1111_v4 = vld [vmem:[#allocation3 + $0xc8] sm:$0xff]  ;;  %v1102_v12 = vld [vmem:[#allocation3 + $0x80] sm:$0xff] }
  0x26   :  { %293 = vmatpush.bf16.msra.mxu2 %v808_v30  ;;  %307 = vmatpush.bf16.msra.mxu3 %v812_v31  ;;  %v1110_v13 = vld [vmem:[#allocation3 + $0xc0] sm:$0xff] }
  0x27   :  { %266 = vmatmul.bf16.vlgmr.msra.gmra.mxu0 %v1053_v32 }
  0x28   :  { %280 = vmatmul.bf16.vlgmr.msra.gmra.mxu1 %v1053_v32  ;;  %648 = vmatpush.bf16.msrb.mxu0 %v1093_v33 }
  0x29   :  { %294 = vmatmul.bf16.vlgmr.msra.gmra.mxu2 %v1053_v32  ;;  %308 = vmatmul.bf16.vlgmr.msra.gmra.mxu3 %v1053_v32 }
  0x2a   :  { %662 = vmatpush.bf16.msrb.mxu1 %v1101_v34  ;;  %676 = vmatpush.bf16.msrb.mxu2 %v1109_v37 }
  0x2b   :  { %690 = vmatpush.bf16.msrb.mxu3 %v1117_v38 }
  0x2c   :  { %649 = vmatpush.bf16.msrb.mxu0 %v1092_v35 }
  0x2e   :  { %663 = vmatpush.bf16.msrb.mxu1 %v1100_v36  ;;  %677 = vmatpush.bf16.msrb.mxu2 %v1108_v41 }
  0x2f   :  { %691 = vmatpush.bf16.msrb.mxu3 %v1116_v42 }
  0x30   :  { %650 = vmatpush.bf16.msrb.mxu0 %v1091_v39 }
  0x32   :  { %664 = vmatpush.bf16.msrb.mxu1 %v1099_v40  ;;  %678 = vmatpush.bf16.msrb.mxu2 %v1107_v45 }
  0x33   :  { %692 = vmatpush.bf16.msrb.mxu3 %v1115_v46 }
  0x34   :  { %651 = vmatpush.bf16.msrb.mxu0 %v1090_v43 }
  0x36   :  { %665 = vmatpush.bf16.msrb.mxu1 %v1098_v44  ;;  %679 = vmatpush.bf16.msrb.mxu2 %v1106_v49 }
  0x37   :  { %693 = vmatpush.bf16.msrb.mxu3 %v1114_v50 }
  0x38   :  { %652 = vmatpush.bf16.msrb.mxu0 %v1089_v47 }
  0x3a   :  { %666 = vmatpush.bf16.msrb.mxu1 %v1097_v48  ;;  %680 = vmatpush.bf16.msrb.mxu2 %v1105_v54 }
  0x3b   :  { %694 = vmatpush.bf16.msrb.mxu3 %v1113_v55 }
  0x3c   :  { %653 = vmatpush.bf16.msrb.mxu0 %v1088_v51 }
  0x3e   :  { %667 = vmatpush.bf16.msrb.mxu1 %v1096_v52  ;;  %681 = vmatpush.bf16.msrb.mxu2 %v1104_v59 }
  0x3f   :  { %695 = vmatpush.bf16.msrb.mxu3 %v1112_v61 }
  0x40   :  { %654 = vmatpush.bf16.msrb.mxu0 %v1087_v57 }
  0x42   :  { %668 = vmatpush.bf16.msrb.mxu1 %v1095_v58  ;;  %682 = vmatpush.bf16.msrb.mxu2 %v1103_v3 }
  0x43   :  { %696 = vmatpush.bf16.msrb.mxu3 %v1111_v4 }
  0x44   :  { %655 = vmatpush.bf16.msrb.mxu0 %v1086_v62 }
  0x46   :  { %669 = vmatpush.bf16.msrb.mxu1 %v1094_v63  ;;  %683 = vmatpush.bf16.msrb.mxu2 %v1102_v12 }
  0x47   :  { %697 = vmatpush.bf16.msrb.mxu3 %v1110_v13 }
  0xa4   :  { %v267_v0 = vpop.f32.mrf.mxu0 }
  0xa5   :  { %v1431_v1 = vadd.f32 %v267_v0, %v84_v56  ;;  %v281_v2 = vpop.f32.mrf.mxu1 }
  0xa6   :  { %v1433_v5 = vadd.f32 %v281_v2, %v85_v60 }
  0xa7   :  { %v314_v6 = vmul.f32 %v1431_v1, %v1431_v1 }
  0xa8   :  { %v315_v7 = vmul.f32 %v1433_v5, %v1433_v5 }
  0xa9   :  { %v322_v9 = vmul.f32 %v314_v6, %v1431_v1 }
  0xaa   :  { %v323_v11 = vmul.f32 %v315_v7, %v1433_v5 }
  0xab   :  { %v330_v14 = vmul.f32 0.044715, %v322_v9 }
  0xac   :  { %v295_v15 = vpop.f32.mrf.mxu2  ;;  %v331_v16 = vmul.f32 0.044715, %v323_v11  ;;  %v309_v18 = vpop.f32.mrf.mxu3 }
  0xad   :  { %v1443_v17 = vadd.f32 %v295_v15, %v86_v8  ;;  %v269_v19 = vpop.f32.mrf.mxu0  ;;  %v338_v20 = vadd.f32 %v330_v14, %v1431_v1  ;;  %v1446_v21 = vadd.f32 %v309_v18, %v87_v10  ;;  %v283_v23 = vpop.f32.mrf.mxu1 }
  0xae   :  { %v1448_v22 = vadd.f32 %v269_v19, %v84_v56  ;;  %v339_v24 = vadd.f32 %v331_v16, %v1433_v5  ;;  %v1453_v26 = vadd.f32 %v283_v23, %v85_v60 }
  0xaf   :  { %v316_v25 = vmul.f32 %v1443_v17, %v1443_v17  ;;  %v317_v27 = vmul.f32 %v1446_v21, %v1446_v21  ;;  %v346_v29 = vmul.f32 0.7978846, %v338_v20 }
  0xb0   :  { %v318_v28 = vmul.f32 %v1448_v22, %v1448_v22  ;;  %v319_v31 = vmul.f32 %v1453_v26, %v1453_v26  ;;  %v347_v32 = vmul.f32 0.7978846, %v339_v24 }
  0xb1   :  { %v324_v30 = vmul.f32 %v316_v25, %v1443_v17  ;;  %v325_v33 = vmul.f32 %v317_v27, %v1446_v21  ;;  %1134 = vtanh.f32 %v346_v29 }
  0xb2   :  { %v326_v34 = vmul.f32 %v318_v28, %v1448_v22  ;;  %v327_v36 = vmul.f32 %v319_v31, %v1453_v26  ;;  %1136 = vtanh.f32 %v347_v32 }
  0xb3   :  { %v332_v35 = vmul.f32 0.044715, %v324_v30  ;;  %v333_v37 = vmul.f32 0.044715, %v325_v33 }
  0xb4   :  { %v334_v38 = vmul.f32 0.044715, %v326_v34  ;;  %v297_v39 = vpop.f32.mrf.mxu2  ;;  %v335_v41 = vmul.f32 0.044715, %v327_v36  ;;  %v311_v43 = vpop.f32.mrf.mxu3 }
  0xb5   :  { %v340_v40 = vadd.f32 %v332_v35, %v1443_v17  ;;  %v298_v42 = vadd.f32 %v297_v39, %v86_v8  ;;  %v341_v44 = vadd.f32 %v333_v37, %v1446_v21  ;;  %v312_v46 = vadd.f32 %v311_v43, %v87_v10 }
  0xb6   :  { %v342_v45 = vadd.f32 %v334_v38, %v1448_v22  ;;  %v343_v48 = vadd.f32 %v335_v41, %v1453_v26 }
  0xb7   :  { %v348_v47 = vmul.f32 0.7978846, %v340_v40  ;;  %v320_v49 = vmul.f32 %v298_v42, %v298_v42  ;;  %v349_v50 = vmul.f32 0.7978846, %v341_v44  ;;  %v321_v52 = vmul.f32 %v312_v46, %v312_v46  ;;  %v1135_v56 = vpop.eup %1134  ;;  %v1119_v40 = vld [vmem:[%s1490_s0] sm:$0xff]  }
  0xb8   :  { %v350_v51 = vmul.f32 0.7978846, %v342_v45  ;;  %v351_v53 = vmul.f32 0.7978846, %v343_v48  ;;  %v1137_v58 = vpop.eup %1136  ;;  %v362_v62 = vadd.f32 1.0, %v1135_v56  ;;  %v1185_v56 = vmov 128.0  }
  0xb9   :  { %1138 = vtanh.f32 %v348_v47  ;;  %v328_v54 = vmul.f32 %v320_v49, %v298_v42  ;;  %v329_v55 = vmul.f32 %v321_v52, %v312_v46  ;;  %v363_v2 = vadd.f32 1.0, %v1137_v58 }
  0xba   :  { %1140 = vtanh.f32 %v349_v50  ;;  %v370_v9 = vmul.f32 0.5, %v362_v62 }
  0xbb   :  { %1142 = vtanh.f32 %v350_v51  ;;  %v336_v57 = vmul.f32 0.044715, %v328_v54  ;;  %v337_v59 = vmul.f32 0.044715, %v329_v55  ;;  %v371_v11 = vmul.f32 0.5, %v363_v2 }
  0xbc   :  { %1144 = vtanh.f32 %v351_v53  ;;  %v378_v16 = vmul.f32 %v370_v9, %v1431_v1  ;;  %v1121_v53 = vunpack.c.h.bf16 %v1119_v40 }
  0xbd   :  { %v344_v60 = vadd.f32 %v336_v57, %v298_v42  ;;  %v345_v61 = vadd.f32 %v337_v59, %v312_v46  ;;  %v379_v20 = vmul.f32 %v371_v11, %v1433_v5 }
  0xbf   :  { %v1139_v63 = vpop.eup %1138  ;;  %v352_v0 = vmul.f32 0.7978846, %v344_v60  ;;  %v353_v4 = vmul.f32 0.7978846, %v345_v61 }
  0xc0   :  { %v1141_v3 = vpop.eup %1140  ;;  %v364_v13 = vadd.f32 1.0, %v1139_v63 }
  0xc1   :  { %v1143_v6 = vpop.eup %1142  ;;  %1146 = vtanh.f32 %v352_v0  ;;  %v365_v15 = vadd.f32 1.0, %v1141_v3 }
  0xc2   :  { %v1145_v7 = vpop.eup %1144  ;;  %1148 = vtanh.f32 %v353_v4  ;;  %v366_v8 = vadd.f32 1.0, %v1143_v6  ;;  %v372_v28 = vmul.f32 0.5, %v364_v13 }
  0xc3   :  { %v367_v10 = vadd.f32 1.0, %v1145_v7  ;;  %v373_v31 = vmul.f32 0.5, %v365_v15  ;;  %1150 = vrcp.f32 %v1185_v56 }
  0xc4   :  { %v374_v12 = vmul.f32 0.5, %v366_v8  ;;  %v380_v1 = vmul.f32 %v372_v28, %v1443_v17  ;;  %v1131_v17 = vld [vmem:[%s1494_s4] ss:$0 sm:$0xff] }
  0xc5   :  { %v375_v14 = vmul.f32 0.5, %v367_v10 }
  0xc6   :  { %v382_v18 = vmul.f32 %v374_v12, %v1448_v22  ;;  %v381_v22 = vmul.f32 %v373_v31, %v1446_v21  ;;  %v1132_v31 = vld [vmem:[%s1495_s5] ss:$0 sm:$0xff] }
  0xc7   :  { %v1147_v19 = vpop.eup %1146  ;;  %v383_v23 = vmul.f32 %v375_v14, %v1453_v26 }
  0xc8   :  { %v1149_v24 = vpop.eup %1148  ;;  %v388_v25 = vpack.c.bf16 %v382_v18, %v378_v16  ;;  %v368_v27 = vadd.f32 1.0, %v1147_v19 }
  0xc9   :  { %v389_v29 = vpack.c.bf16 %v383_v23, %v379_v20  ;;  %v369_v30 = vadd.f32 1.0, %v1149_v24  ;;  %v1151_v57 = vpop.eup %1150 }
  0xca   :  { %656 = vmatmul.bf16.vlgmr.msrb.gmra.mxu0 %v388_v25  ;;  %v376_v32 = vmul.f32 0.5, %v368_v27  ;;  %v732_v58 = vmul.f32 128.0, %v1151_v57  ;;  %vm736_vm0 = vweird.f32 %v1151_v57 }
  0xcb   :  { %670 = vmatmul.bf16.vlgmr.msrb.gmra.mxu1 %v389_v29  ;;  %v377_v33 = vmul.f32 0.5, %v369_v30 }
  0xcc   :  { %v384_v34 = vmul.f32 %v376_v32, %v298_v42  ;;  %v1120_v42 = vunpack.c.l.bf16 %v1119_v40  ;;  %v733_v59 = vsub.f32 1.0, %v732_v58 }
  0xcd   :  { %v385_v35 = vmul.f32 %v377_v33, %v312_v46 }
  0xce   :  { %v390_v5 = vpack.c.bf16 %v384_v34, %v380_v1  ;;  %v734_v60 = vmul.f32 %v1151_v57, %v733_v59  ;;  %v1133_v34 = vld [vmem:[%s1496_s6] ss:$0 sm:$0xff] }
  0xcf   :  { %v391_v36 = vpack.c.bf16 %v385_v35, %v381_v22 }
  0xd0   :  { %684 = vmatmul.bf16.vlgmr.msrb.gmra.mxu2 %v390_v5  ;;  %v735_v61 = vadd.f32 %v1151_v57, %v734_v60 }
  0xd1   :  { %698 = vmatmul.bf16.vlgmr.msrb.gmra.mxu3 %v391_v36 }
  0xd2   :  { %v737_v62 = vsel %vm736_vm0, %v1151_v57, %v735_v61 }
 0x147   :  { %v657_v26 = vpop.f32.mrf.mxu0 }
 0x148   :  { %v671_v37 = vpop.f32.mrf.mxu1 }
 0x149   :  { %v672_v38 = vadd.f32 %v671_v37, %v657_v26 }
 0x14f   :  { %v659_v44 = vpop.f32.mrf.mxu0 }
 0x150   :  { %v673_v45 = vpop.f32.mrf.mxu1 }
 0x151   :  { %v674_v47 = vadd.f32 %v673_v45, %v659_v44 }
 0x153   :  { %v685_v39 = vpop.f32.mrf.mxu2 }
 0x154   :  { %v686_v41 = vadd.f32 %v685_v39, %v672_v38  ;;  %v699_v43 = vpop.f32.mrf.mxu3 }
 0x156   :  { %v700_v21 = vadd.f32 %v699_v43, %v686_v41 }
 0x158   :  { %v717_v46 = vadd.f32 %v1131_v17, %v700_v21 }
 0x15a   :  { %v723_v48 = vadd.f32 %v1120_v42, %v717_v46 }
 0x15b   :  { %v687_v49 = vpop.f32.mrf.mxu2 }
 0x15c   :  { %v688_v50 = vadd.f32 %v687_v49, %v674_v47  ;;  %727 = vadd.xlane.f32.xlu0 %v723_v48  ;;  %v701_v51 = vpop.f32.mrf.mxu3 }
 0x15e   :  { %v702_v52 = vadd.f32 %v701_v51, %v688_v50 }
 0x160   :  { %v718_v54 = vadd.f32 %v1131_v17, %v702_v52 }
 0x162   :  { %v724_v55 = vadd.f32 %v1121_v53, %v718_v54 }
 0x164   :  { %729 = vadd.xlane.f32.xlu0 %v724_v55 }
 0x1cf   :  { %v728_v63 = vpop.xlane.xlu0 %727 }
 0x1d0   :  { %v738_v0 = vmul.f32 %v737_v62, %v728_v63 }
 0x1d2   :  { %v740_v2 = vsub.f32 %v723_v48, %v738_v0 }
 0x1d4   :  { %v742_v3 = vmul.f32 %v740_v2, %v740_v2 }
 0x1d6   :  { %744 = vadd.xlane.f32.xlu1 %v742_v3 }
 0x1d7   :  { %v730_v4 = vpop.xlane.xlu0 %729 }
 0x1d8   :  { %v739_v6 = vmul.f32 %v737_v62, %v730_v4 }
 0x1da   :  { %v741_v7 = vsub.f32 %v724_v55, %v739_v6 }
 0x1dc   :  { %v743_v8 = vmul.f32 %v741_v7, %v741_v7 }
 0x1de   :  { %746 = vadd.xlane.f32.xlu1 %v743_v8 }
 0x249   :  { %v745_v9 = vpop.xlane.xlu1 %744 }
 0x24a   :  { %v748_v10 = vmul.f32 %v745_v9, %v737_v62 }
 0x24c   :  { %v750_v11 = vadd.f32 1e-12, %v748_v10 }
 0x24e   :  { %1152 = vrsqrt.f32 %v750_v11  ;;  %vm758_vm2 = vweird.f32 %v750_v11 }
 0x251   :  { %v747_v12 = vpop.xlane.xlu1 %746 }
 0x252   :  { %v749_v13 = vmul.f32 %v747_v12, %v737_v62 }
 0x254   :  { %v1153_v14 = vpop.eup %1152  ;;  %v751_v15 = vadd.f32 1e-12, %v749_v13 }
 0x255   :  { %v753_v16 = vmul.f32 %v1153_v14, %v750_v11  ;;  %vm759_vm1 = vweird.f32 %v1153_v14 }
 0x256   :  { %1154 = vrsqrt.f32 %v751_v15  ;;  %vm760_vm3 = vmor %vm758_vm2, %vm759_vm1  ;;  %vm768_vm5 = vweird.f32 %v751_v15 }
 0x257   :  { %v754_v18 = vmul.f32 %v1153_v14, %v753_v16 }
 0x259   :  { %v755_v19 = vmul.f32 0.5, %v754_v18 }
 0x25b   :  { %v756_v20 = vsub.f32 1.5, %v755_v19 }
 0x25c   :  { %v1155_v23 = vpop.eup %1154 }
 0x25d   :  { %v757_v24 = vmul.f32 %v1153_v14, %v756_v20  ;;  %v763_v25 = vmul.f32 %v1155_v23, %v751_v15  ;;  %vm769_vm4 = vweird.f32 %v1155_v23 }
 0x25e   :  { %vm770_vm6 = vmor %vm768_vm5, %vm769_vm4 }
 0x25f   :  { %v764_v27 = vmul.f32 %v1155_v23, %v763_v25  ;;  %v761_v28 = vsel %vm760_vm3, %v1153_v14, %v757_v24 }
 0x260   :  { %v772_v32 = vmul.f32 %v761_v28, %v740_v2 }
 0x261   :  { %v765_v29 = vmul.f32 0.5, %v764_v27 }
 0x262   :  { %v777_v22 = vmul.f32 %v1132_v31, %v772_v32 }
 0x263   :  { %v766_v30 = vsub.f32 1.5, %v765_v29 }
 0x264   :  { %v782_v36 = vadd.f32 %v1133_v34, %v777_v22 }
 0x265   :  { %v767_v33 = vmul.f32 %v1155_v23, %v766_v30 }
 0x267   :  { %v771_v1 = vsel %vm770_vm6, %v1155_v23, %v767_v33 }
 0x268   :  { %v773_v35 = vmul.f32 %v771_v1, %v741_v7 }
 0x26a   :  { %v778_v5 = vmul.f32 %v1132_v31, %v773_v35 }
 0x26c   :  { %v783_v26 = vadd.f32 %v1133_v34, %v778_v5 }
 0x26e   :  { %v1125_v37 = vpack.c.bf16 %v783_v26, %v782_v36 }
 0x270   :  { %1126 = vst [vmem:[%s1497_s7] sm:$0xff] %v1125_v37  }
 0x271   :  { %792 = vsyncpa [#allocation4], 1 }

// kernel: proposal_categorizer_forward.13
= control target key start
LH: loop header
LB: loop body
LE: loop exit
PB: predicated region body
PF: predicated region fallthrough
CT: control target
= control target key end

     0   :  { %8 = vsyncpa [#allocation3], 0  ;;  %s264_s0 = inlined_call_operand.vmem [shape: bf16[2,128], index: 0, kind: input, shape index: {}]   ;;  %s265_s1 = inlined_call_operand.hbm [shape: bf16[128,128], index: 1, kind: input, shape index: {}]   ;;  %s266_s2 = inlined_call_operand.vmem [shape: f32[1,128], index: 2, kind: input, shape index: {}]   ;;  %s267_s3 = inlined_call_operand.hbm [shape: f32[2,128], index: 3, kind: output, shape index: {}]  }
   0x1   :  { %9 = vsyncpa [#allocation4], 0  ;;  %s16_s14 = sshll.u32 %s265_s1, 4  ;;  %s228_s15 = smov [#allocation2]   ;;  %s17_s14 = int_to_ptr.hbm [resolvable:$true] %s16_s14 }
   0x2   :  { %s18_s16 = sshll.u32 %s228_s15, 4  ;;  %s229_s17 = smov 64   ;;  %s19_s16 = int_to_ptr.vmem [resolvable:$true] %s18_s16 }
   0x3   :  { %s230_s18 = smov 4  }
   0x4   :  { %24 = dma.hbm_to_vmem [thread:$0]  %s17_s14, 1024, %s19_s16, [#allocation3], %s229_s17, %s229_s17, %s230_s18  }
   0x5   :  { %224 = dma.done.wait [#allocation3], 1024  }
   0x6   :  { %225 = vsyncadd [#allocation3], 4294966272  ;;  %v170_v0 = vld [vmem:[#allocation2 + $0x38] sm:$0xff]  ;;  %v169_v1 = vld [vmem:[#allocation2 + $0x30] sm:$0xff]  ;;  %s231_s22 = smov [#allocation5]   ;;  %s121_s26 = sshll.u32 %s267_s3, 4  ;;  %s122_s26 = int_to_ptr.hbm [resolvable:$true] %s121_s26 }
   0x7   :  { %100 = vmatpush.bf16.msra.mxu0 %v170_v0  ;;  %v168_v2 = vld [vmem:[#allocation2 + $0x28] sm:$0xff]  ;;  %v167_v3 = vld [vmem:[#allocation2 + $0x20] sm:$0xff]  ;;  %v166_v4 = vld [vmem:[#allocation2 + $0x18] sm:$0xff]  ;;  %s119_s23 = sshll.u32 %s231_s22, 4  ;;  %s120_s23 = int_to_ptr.vmem [resolvable:$true] %s119_s23 }
   0x8   :  { %v165_v5 = vld [vmem:[#allocation2 + $0x10] sm:$0xff]  ;;  %v164_v6 = vld [vmem:[#allocation2 + $0x8] sm:$0xff]  ;;  %v163_v7 = vld [vmem:[#allocation2] sm:$0xff] }
   0x9   :  { %v31_v8 = vld [vmem:[%s264_s0] sm:$0x1] }
   0xa   :  { %v175_v9 = vld [vmem:[%s266_s2] ss:$0 sm:$0xff] }
   0xb   :  { %101 = vmatpush.bf16.msra.mxu0 %v169_v1 }
   0xf   :  { %102 = vmatpush.bf16.msra.mxu0 %v168_v2 }
  0x13   :  { %103 = vmatpush.bf16.msra.mxu0 %v167_v3 }
  0x17   :  { %104 = vmatpush.bf16.msra.mxu0 %v166_v4 }
  0x1b   :  { %105 = vmatpush.bf16.msra.mxu0 %v165_v5 }
  0x1f   :  { %106 = vmatpush.bf16.msra.mxu0 %v164_v6 }
  0x23   :  { %107 = vmatpush.bf16.msra.mxu0 %v163_v7 }
  0x26   :  { %108 = vmatmul.bf16.vlgmr.msra.gmra.mxu0 %v31_v8 }
  0xa3   :  { %v109_v10 = vpop.f32.mrf.mxu0 }
  0xa4   :  { %v110_v11 = vadd.f32 %v175_v9, %v109_v10 }
  0xa6   :  { %113 = vst [vmem:[#allocation5] sm:$0x3] %v110_v11 }
  0xa7   :  { %124 = dma.vmem_to_hbm [thread:$0]  %s120_s23, 32, %s122_s26, [#allocation4]  }
  0xab   :  { %v111_v12 = vpop.f32.mrf.mxu0 }
  0xac   :  { %226 = dma.done.wait [#allocation4], 32  }
  0xad   :  { %227 = vsyncadd [#allocation4], 4294967264 }
  0xae   :  { %129 = vsyncpa [#allocation3], 1 }
  0xaf   :  { %130 = vsyncpa [#allocation4], 1 }

// kernel: proposal_categorizer_forward.11
= control target key start
LH: loop header
LB: loop body
LE: loop exit
PB: predicated region body
PF: predicated region fallthrough
CT: control target
= control target key end

     0   :  { %14 = vsyncpa [#allocation3], 0  ;;  %s1174_s30 = smov 0   ;;  %s1176_s10 = smov 0   ;;  %s1269_s0 = inlined_call_operand.vmem [shape: bf16[2,8,128], index: 0, kind: input, shape index: {}]   ;;  %s1270_s1 = inlined_call_operand.vmem [shape: bf16[2,2,8,64], index: 1, kind: input, shape index: {}]   ;;  %s1271_s2 = inlined_call_operand.vmem [shape: bf16[2,2,8,64], index: 2, kind: input, shape index: {}]   ;;  %s1272_s3 = inlined_call_operand.vmem [shape: bf16[2,2,8,64], index: 3, kind: input, shape index: {}]   ;;  %s1273_s4 = inlined_call_operand.vmem [shape: f32[2,1,8], index: 4, kind: input, shape index: {}]   ;;  %s1274_s5 = inlined_call_operand.hbm [shape: bf16[128,128], index: 5, kind: input, shape index: {}]   ;;  %s1275_s6 = inlined_call_operand.vmem [shape: f32[1,128], index: 6, kind: input, shape index: {}]   ;;  %s1276_s7 = inlined_call_operand.vmem [shape: f32[1,128], index: 7, kind: input, shape index: {}]   ;;  %s1277_s8 = inlined_call_operand.vmem [shape: f32[1,128], index: 8, kind: input, shape index: {}]   ;;  %s1278_s9 = inlined_call_operand.vmem [shape: bf16[2,8,128], index: 9, kind: output, shape index: {}]  }
   0x1   :  { %s1178_s11 = smov 0  }
   0x2 LB: > { %s939_s12 = sadd.s32 4294967295, %s1115_s11   ;;  %s32_s13 = sadd.s32 1, %s1111_s10  ;;  %s1115_s11 = sphi %s1178_s11, %s20_s11   ;;  %s1111_s10 = sphi %s1176_s10, %s1280_s10   ;;  %s1107_s30 = sphi %s1174_s30, %s1279_s30  }
   0x3   : > { %p34_p0 = scmp.ge.s32.totalorder %s32_s13, 2  ;;  %p941_p1 = scmp.ge.s32.totalorder %s1115_s11, 1 }
   0x4   : > { %p283_p2 = scmp.lt.s32.totalorder %s1115_s11, 3  ;;  %p1011_p4 = scmp.eq.s32.totalorder %s939_s12, 0 }
   0x5   : > { %s1282_s13 = smov (%p34_p0, %s32_s13), 0  ;;  %s294_s16 = sshll.u32 %s1274_s5, 4  ;;  %s295_s16 = int_to_ptr.hbm [resolvable:$true] %s294_s16 }
   0x6   : > { %p284_p3 = pnand %p941_p1, %p283_p2  ;;  %s1117_s17 = smov [#allocation2]  }
   0x7   : > { %s296_s18 = sshll.u32 %s1117_s17, 4  ;;  %s1118_s19 = smov 64   ;;  %s297_s18 = int_to_ptr.vmem [resolvable:$true] %s296_s18 }
   0x8   : > { %p1007_p5 = pneg %p284_p3  ;;  %s1119_s20 = smov 4  }
   0x9   : > { %364 = sbr.rel (%p284_p3) target bundleno = 972 (0x3cc), region = 56 }
   0xa   : > { %p1008_p6 = pnand %p1011_p4, %p1007_p5 }
   0xc   : > { %1010 = dma.hbm_to_vmem [thread:$0]  (!%p1008_p6), %s295_s16, 1024, %s297_s18, [#allocation3], %s1118_s19, %s1118_s19, %s1119_s20  }
   0xe   : > { %1102 = dma.done.wait (%p1011_p4), [#allocation3], 1024  }
   0xf   : > { %1104 = vsyncadd (%p1011_p4), [#allocation3], 4294966272  ;;  %p426_p7 = scmp.lt.s32.totalorder %s1107_s30, 1  ;;  %vm474_vm0 = vcmask 523264   ;;  %vm513_vm1 = vcmask 64512   ;;  %vm543_vm2 = vcmask 1043456  }
  0x10   : > { %v1120_v46 = vmov 1983009808   ;;  %v1121_v52 = vmov 1934713408   ;;  %v1002_v59 = vld [vmem:[#allocation2 + $0x38] sm:$0xff]  ;;  %v1001_v63 = vld [vmem:[#allocation2 + $0x30] sm:$0xff] }
  0x11   : > { %s1284_s30 = smov (!%p426_p7, %s1107_s30), 1  ;;  %v593_v47 = vunpack.c.l.s4 %v1120_v46  ;;  %v600_v53 = vunpack.c.l.s4 %v1121_v52  ;;  %746 = vmatpush.bf16.msra.mxu2 %v1002_v59  ;;  %vm597_vm3 = vcmask 1047556   ;;  %s1122_s17 = smov 64  }
  0x12   : > { %s1199_s21 = sshll.u32 %s1284_s30, 3  ;;  %s453_s12 = scalar_lea.vmem %s1273_s4, %s1284_s30 }
  0x13   : > { %s445_s24 = scalar_lea.vmem %s1271_s2, %s1199_s21  ;;  %s440_s27 = scalar_lea.vmem %s1270_s1, %s1199_s21  ;;  %v468_v6 = vld [vmem:[%s453_s12] sm:$0x1]  ;;  %v594_v55 = vunpack.c.0.s8 %v593_v47  ;;  %v601_v60 = vunpack.c.0.s8 %v600_v53 }
  0x14   : > { %v464_v0 = vld [vmem:[%s445_s24] sm:$0xf]  ;;  %v465_v1 = vld [vmem:[%s445_s24 + $0x4] sm:$0xf]  ;;  %v469_v7 = vsub.f32 1.0, %v468_v6  ;;  %s450_s16 = scalar_lea.vmem %s1272_s3, %s1199_s21  ;;  %v1000_v6 = vld [vmem:[#allocation2 + $0x28] sm:$0xff] }
  0x15   : > { %v479_v2 = vsel %vm474_vm0, %v464_v0, 0  ;;  %v498_v3 = vsel %vm474_vm0, %v465_v1, 0  ;;  %v462_v4 = vld [vmem:[%s440_s27] sm:$0xf]  ;;  %v463_v5 = vld [vmem:[%s440_s27 + $0x4] sm:$0xf]  ;;  %747 = vmatpush.bf16.msra.mxu2 %v1001_v63 }
  0x16   : > { %488 = vmatpush.bf16.xpose.msra.mxu0 %v479_v2  ;;  %507 = vmatpush.bf16.xpose.msra.mxu1 %v498_v3  ;;  %v470_v8 = vmul.f32 -1e+09, %v469_v7  ;;  %v466_v18 = vld [vmem:[%s450_s16] sm:$0xf]  ;;  %v467_v20 = vld [vmem:[%s450_s16 + $0x4] sm:$0xf] }
  0x17   : > { %v545_v19 = vsel %vm543_vm2, %v466_v18, 0  ;;  %v564_v21 = vsel %vm543_vm2, %v467_v20, 0  ;;  %s946_s18 = sshll.u32 %s1284_s30, 2 }
  0x18   : > { %v472_v9 = vperm.slane %v470_v8, 0  ;;  %554 = vmatpush.bf16.msra.mxu3 %v545_v19  ;;  %s432_s21 = scalar_lea.vmem %s1269_s0, %s946_s18  ;;  %s460_s12 = scalar_lea.vmem %s1278_s9, %s946_s18 }
  0x19   : > { %748 = vmatpush.bf16.msra.mxu2 %v1000_v6 }
  0x1c   : > { %573 = vmatpush.bf16.msrb.mxu3 %v564_v21 }
  0x1d   : > { %954 = vmatmul.msk.bf16.vlgmr.msra.gmra.mxu0 %vm474_vm0, %v462_v4  ;;  %955 = vmatmul.msk.bf16.vlgmr.msra.gmra.mxu1 %vm474_vm0, %v463_v5 }
  0x9a   : > { %v490_v10 = vpop.f32.mrf.mxu0  ;;  %v509_v11 = vpop.f32.mrf.mxu1 }
  0x9b   : > { %v491_v12 = vadd.f32 %v490_v10, %v472_v9  ;;  %v510_v14 = vadd.f32 %v509_v11, %v472_v9 }
  0x9d   : > { %v514_v13 = vsel %vm513_vm1, %v491_v12, -inf  ;;  %v517_v17 = vsel %vm513_vm1, %v510_v14, -inf }
  0x9e   : > { %515 = vmax.xlane.f32.xlu0 %v514_v13  ;;  %v999_v13 = vld [vmem:[#allocation2 + $0x20] sm:$0xff] }
  0x9f   : > { %749 = vmatpush.bf16.msra.mxu2 %v999_v13  ;;  %v1046_v13 = vld [vmem:[%s1277_s8] ss:$0 sm:$0xff] }
  0xa2   : > { %v492_v15 = vpop.f32.mrf.mxu0  ;;  %v511_v16 = vpop.f32.mrf.mxu1 }
  0xa6   : > { %518 = vmax.xlane.f32.xlu0 %v517_v17 }
 0x111   : > { %v516_v22 = vpop.xlane.xlu0 %515 }
 0x112   : > { %v520_v23 = vsub.f32 %v491_v12, %v516_v22 }
 0x114   : > { %v522_v24 = vpack.c.bf16 %v520_v23, %v520_v23  ;;  %v998_v23 = vld [vmem:[#allocation2 + $0x18] sm:$0xff] }
 0x115   : > { %750 = vmatpush.bf16.msra.mxu2 %v998_v23 }
 0x116   : > { %v524_v25 = vunpack.c.l.bf16 %v522_v24 }
 0x118   : > { %v526_v26 = vmul.f32 1.442695, %v524_v25 }
 0x119   : > { %v519_v27 = vpop.xlane.xlu0 %518 }
 0x11a   : > { %1047 = vpow2.f32 %v526_v26  ;;  %v521_v28 = vsub.f32 %v510_v14, %v519_v27 }
 0x11c   : > { %v523_v29 = vpack.c.bf16 %v521_v28, %v521_v28 }
 0x11e   : > { %v525_v30 = vunpack.c.l.bf16 %v523_v29 }
 0x120   : > { %v1048_v31 = vpop.eup %1047  ;;  %v528_v32 = vmul.f32 1.442695, %v525_v30 }
 0x121   : > { %v530_v33 = vpack.c.bf16 %v1048_v31, %v1048_v31  ;;  %v997_v31 = vld [vmem:[#allocation2 + $0x10] sm:$0xff] }
 0x122   : > { %1049 = vpow2.f32 %v528_v32  ;;  %751 = vmatpush.bf16.msra.mxu2 %v997_v31 }
 0x123   : > { %956 = vmatmul.msk.bf16.vlgmr.msra.gmra.mxu3 %vm513_vm1, %v530_v33  ;;  %v532_v34 = vunpack.c.l.bf16 %v530_v33 }
 0x125   : > { %v534_v35 = vsel %vm513_vm1, %v532_v34, 0.0 }
 0x126   : > { %535 = vadd.xlane.f32.xlu1 %v534_v35 }
 0x128   : > { %v1050_v36 = vpop.eup %1049 }
 0x129   : > { %v531_v37 = vpack.c.bf16 %v1050_v36, %v1050_v36 }
 0x12b   : > { %v533_v38 = vunpack.c.l.bf16 %v531_v37 }
 0x12d   : > { %v537_v39 = vsel %vm513_vm1, %v533_v38, 0.0  ;;  %v996_v38 = vld [vmem:[#allocation2 + $0x8] sm:$0xff] }
 0x12e   : > { %538 = vadd.xlane.f32.xlu1 %v537_v39  ;;  %752 = vmatpush.bf16.msra.mxu2 %v996_v38 }
 0x133   : > { %957 = vmatmul.msk.bf16.vlgmr.msrb.gmra.mxu3 %vm513_vm1, %v531_v37 }
 0x199   : > { %v536_v40 = vpop.xlane.xlu1 %535 }
 0x19a   : > { %1051 = vrcp.f32 %v536_v40 }
 0x1a0   : > { %v1052_v44 = vpop.eup %1051 }
 0x1a1   : > { %v539_v42 = vpop.xlane.xlu1 %538 }
 0x1a2   : > { %1053 = vrcp.f32 %v539_v42 }
 0x1a6   : > { %v556_v41 = vpop.f32.mrf.mxu3 }
 0x1a7   : > { %v581_v45 = vmul.f32 %v1052_v44, %v556_v41 }
 0x1a8   : > { %v1054_v48 = vpop.eup %1053 }
 0x1a9   : > { %v583_v50 = vpack.c.bf16 %v581_v45, %v581_v45 }
 0x1ab   : > { %v588_v56 = vshrl.u32 %v583_v50, 16 }
 0x1ae   : > { %v558_v43 = vpop.f32.mrf.mxu3 }
 0x1af   : > { %v995_v43 = vld [vmem:[#allocation2] sm:$0xff] }
 0x1b0   : > { %753 = vmatpush.bf16.msra.mxu2 %v995_v43 }
 0x1b6   : > { %v575_v49 = vpop.f32.mrf.mxu3 }
 0x1b7   : > { %v582_v51 = vmul.f32 %v1054_v48, %v575_v49  ;;  %v759_v48 = vld [vmem:[%s432_s21] sm:$0xf] }
 0x1b8   : > { %v1044_v49 = vld [vmem:[%s1275_s6] ss:$0 sm:$0xff] }
 0x1b9   : > { %v584_v54 = vpack.c.bf16 %v582_v51, %v582_v51 }
 0x1bb   : > { %v587_v57 = vpack.i.b16 %v584_v54, %v583_v50  ;;  %v589_v58 = vshrl.u32 %v584_v54, 16  ;;  %v760_v50 = vunpack.c.l.bf16 %v759_v48 }
 0x1bd   : > { %v590_v61 = vpack.i.b16 %v589_v58, %v588_v56  ;;  %v595_v62 = vperm.slane %v587_v57, %v594_v55 }
 0x1be   : > { %v577_v0 = vpop.f32.mrf.mxu3 }
 0x1bf   : > { %v596_v1 = vrot.slane %v595_v62, 4  ;;  %v615_v2 = vperm.slane %v590_v61, %v594_v55  ;;  %v602_v3 = vperm.slane %v595_v62, %v601_v60 }
 0x1c1   : > { %v598_v4 = vsel %vm597_vm3, 0, %v596_v1  ;;  %v616_v5 = vrot.slane %v615_v2, 4  ;;  %v621_v8 = vperm.slane %v615_v2, %v601_v60  ;;  %v607_v10 = vrot.slane %v602_v3, 4 }
 0x1c2   : > { %v606_v7 = vperm.slane %v598_v4, %v601_v60 }
 0x1c3   : > { %v617_v9 = vsel %vm597_vm3, 0, %v616_v5  ;;  %v626_v15 = vrot.slane %v621_v8, 4  ;;  %v608_v18 = vsel %vm597_vm3, 0, %v607_v10 }
 0x1c4   : > { %v609_v11 = vrot.slane %v606_v7, 4  ;;  %v625_v12 = vperm.slane %v617_v9, %v601_v60 }
 0x1c5   : > { %v627_v24 = vsel %vm597_vm3, 0, %v626_v15 }
 0x1c6   : > { %v610_v14 = vsel %vm597_vm3, 0, %v609_v11  ;;  %v628_v16 = vrot.slane %v625_v12, 4  ;;  %v630_v20 = vsel %vm597_vm3, %v609_v11, %v602_v3  ;;  %v1045_v11 = vld [vmem:[%s1276_s7] ss:$0 sm:$0xff] }
 0x1c7   : > { %v635_v17 = vrot.slane %v610_v14, 4  ;;  %v634_v28 = vperm.slane %v630_v20, %v594_v55 }
 0x1c8   : > { %v629_v19 = vsel %vm597_vm3, 0, %v628_v16  ;;  %v647_v26 = vsel %vm597_vm3, %v628_v16, %v621_v8 }
 0x1c9   : > { %v636_v21 = vsel %vm597_vm3, %v635_v17, %v608_v18  ;;  %v652_v22 = vrot.slane %v629_v19, 4  ;;  %v651_v33 = vperm.slane %v647_v26, %v594_v55 }
 0x1ca   : > { %v640_v25 = vperm.slane %v636_v21, %v594_v55 }
 0x1cb   : > { %v653_v27 = vsel %vm597_vm3, %v652_v22, %v627_v24 }
 0x1cc   : > { %v641_v29 = vrot.slane %v640_v25, 4  ;;  %v657_v30 = vperm.slane %v653_v27, %v594_v55  ;;  %v1123_v55 = vmov 128.0  }
 0x1cd   : > { %1055 = vrcp.f32 %v1123_v55 }
 0x1ce   : > { %v642_v32 = vsel %vm597_vm3, %v641_v29, %v634_v28  ;;  %v658_v34 = vrot.slane %v657_v30, 4 }
 0x1cf   : > { %v646_v35 = vperm.slane %v642_v32, %v601_v60 }
 0x1d0   : > { %v659_v36 = vsel %vm597_vm3, %v658_v34, %v651_v33 }
 0x1d1   : > { %v663_v37 = vperm.slane %v659_v36, %v601_v60  ;;  %v667_v39 = vshrl.u32 %v646_v35, 16 }
 0x1d3   : > { %v668_v40 = vshrl.u32 %v663_v37, 16  ;;  %v666_v41 = vpack.i.b16 %v663_v37, %v646_v35  ;;  %v1056_v56 = vpop.eup %1055 }
 0x1d4   : > { %v767_v57 = vmul.f32 128.0, %v1056_v56  ;;  %vm771_vm4 = vweird.f32 %v1056_v56 }
 0x1d5   : > { %v669_v42 = vpack.i.b16 %v668_v40, %v667_v39 }
 0x1d6   : > { %v768_v58 = vsub.f32 1.0, %v767_v57 }
 0x1d7   : > { %v670_v44 = vunpack.c.l.b16 %v669_v42 }
 0x1d8   : > { %v769_v59 = vmul.f32 %v1056_v56, %v768_v58 }
 0x1d9   : > { %v671_v45 = vpack.c.b16 %v670_v44, %v670_v44 }
 0x1da   : > { %v770_v60 = vadd.f32 %v1056_v56, %v769_v59 }
 0x1db   : > { %672 = vrot.lane.b32.xlu2 %v671_v45, %s1122_s17 }
 0x1dc   : > { %v772_v61 = vsel %vm771_vm4, %v1056_v56, %v770_v60 }
 0x235   : > { %v673_v46 = vpop.permute.xlu2 %672 }
 0x236   : > { %v676_v47 = vsel %vm474_vm0, %v666_v41, %v673_v46 }
 0x237   : > { %754 = vmatmul.bf16.vlgmr.msra.gmra.mxu2 %v676_v47 }
 0x2ba   : > { %v755_v51 = vpop.f32.mrf.mxu2 }
 0x2bb   : > { %v756_v52 = vadd.f32 %v1044_v49, %v755_v51 }
 0x2bd   : > { %v761_v53 = vadd.f32 %v760_v50, %v756_v52 }
 0x2bf   : > { %764 = vadd.xlane.f32.xlu2 %v761_v53 }
 0x2c2   : > { %v757_v54 = vpop.f32.mrf.mxu2 }
 0x332   : > { %v765_v62 = vpop.xlane.xlu2 %764 }
 0x333   : > { %v773_v63 = vmul.f32 %v772_v61, %v765_v62 }
 0x335   : > { %v774_v0 = vsub.f32 %v761_v53, %v773_v63 }
 0x337   : > { %v775_v1 = vmul.f32 %v774_v0, %v774_v0 }
 0x339   : > { %776 = vadd.xlane.f32.xlu0 %v775_v1 }
 0x3ac   : > { %v777_v2 = vpop.xlane.xlu0 %776 }
 0x3ad   : > { %v778_v3 = vmul.f32 %v777_v2, %v772_v61 }
 0x3af   : > { %v779_v4 = vadd.f32 1e-12, %v778_v3 }
 0x3b1   : > { %1057 = vrsqrt.f32 %v779_v4  ;;  %vm786_vm6 = vweird.f32 %v779_v4 }
 0x3b7   : > { %v1058_v5 = vpop.eup %1057 }
 0x3b8   : > { %v781_v6 = vmul.f32 %v1058_v5, %v779_v4  ;;  %vm787_vm5 = vweird.f32 %v1058_v5 }
 0x3b9   : > { %vm788_vm7 = vmor %vm786_vm6, %vm787_vm5 }
 0x3ba   : > { %v782_v7 = vmul.f32 %v1058_v5, %v781_v6 }
 0x3bc   : > { %v783_v8 = vmul.f32 0.5, %v782_v7 }
 0x3be   : > { %v784_v9 = vsub.f32 1.5, %v783_v8 }
 0x3c0   : > { %v785_v10 = vmul.f32 %v1058_v5, %v784_v9 }
 0x3c2   : > { %v789_v12 = vsel %vm788_vm7, %v1058_v5, %v785_v10 }
 0x3c3   : > { %v790_v14 = vmul.f32 %v789_v12, %v774_v0 }
 0x3c5   : > { %v794_v15 = vmul.f32 %v1045_v11, %v790_v14 }
 0x3c7   : > { %v798_v16 = vadd.f32 %v1046_v13, %v794_v15 }
 0x3c9   : > { %v799_v17 = vpack.c.bf16 %v798_v16, %v798_v16 }
 0x3cb   : > { %800 = vst [vmem:[%s460_s12] sm:$0xf] %v799_v17 }
 0x3cc PF: > { %s20_s11 = sadd.s32 1, %s1115_s11   ;;  %s1279_s30 = smov %s1111_s10 }
 0x3cd   : > { %p17_p8 = scmp.ge.s32.totalorder %s20_s11, 4   ;;  %s1280_s10 = smov %s1282_s13 }
 0x3cf   :  { %19 = sbr.rel (!%p17_p8) target bundleno = 2 (0x2), region = 103 }
 0x3d4   :  { %826 = vsyncpa [#allocation3], 1 }
 0x3d5   :  { %828 = vsyncpa [#allocation3 + $0x1], 1 }

</bundles_post_ra>
